<compile_context>
chip_gen: v5e
topology: v5e:2x2
jax: 0.10.0
libtpu: 0.0.40
codegen_flags: <defaults>
</compile_context>

<pallas_src>
import functools
import math

import jax
import jax.numpy as jnp
from jax.experimental import pallas as pl
from jax.experimental.pallas import tpu as pltpu

_VMEM_LIMIT = 64 * 1024 * 1024


# ----------------------------- tiling helper -----------------------------

def _pick_tile(dim, target, base):
    """Largest tile <= target that is a multiple of `base` and divides `dim`;
    falls back to the full dim (always legal: block == full array dim)."""
    if dim <= target:
        return dim
    t = (target // base) * base
    while t >= base:
        if dim % t == 0:
            return t
        t -= base
    return dim


# -------------------- K-tiled matmul (+bias/act/residual) ----------------

def _matmul_kernel(x_ref, w_ref, *rest, has_bias, has_res, activation):
    pos = 0
    b_ref = rest[pos] if has_bias else None
    pos += int(has_bias)
    r_ref = rest[pos] if has_res else None
    pos += int(has_res)
    o_ref, acc_ref = rest[pos], rest[pos + 1]

    @pl.when(pl.program_id(2) == 0)
    def _():
        acc_ref[...] = jnp.zeros_like(acc_ref)

    acc_ref[...] += jnp.dot(x_ref[...], w_ref[...],
                            preferred_element_type=jnp.float32)

    @pl.when(pl.program_id(2) == pl.num_programs(2) - 1)
    def _():
        y = acc_ref[...]
        if has_bias:
            y = y + b_ref[...].astype(jnp.float32)
        if activation == "quick_gelu":          # CLIP QuickGELU: x*sigmoid(1.702x)
            y = y * jax.nn.sigmoid(1.702 * y)
        if has_res:
            y = y + r_ref[...].astype(jnp.float32)
        o_ref[...] = y.astype(o_ref.dtype)


def matmul(x, w, bias=None, residual=None, activation=None,
           out_dtype=jnp.bfloat16, tm=512, tn=512, tk=1024):
    """y = act(x @ w + bias) + residual.  bf16 operands, f32 accumulation."""
    M, K = x.shape
    N = w.shape[1]
    tm = _pick_tile(M, tm, 8)
    tn = _pick_tile(N, tn, 128)
    tk = _pick_tile(K, tk, 128)

    in_specs = [pl.BlockSpec((tm, tk), lambda i, j, k: (i, k)),
                pl.BlockSpec((tk, tn), lambda i, j, k: (k, j))]
    args = [x, w]
    if bias is not None:
        in_specs.append(pl.BlockSpec((1, tn), lambda i, j, k: (0, j)))
        args.append(bias.reshape(1, N))
    if residual is not None:
        in_specs.append(pl.BlockSpec((tm, tn), lambda i, j, k: (i, j)))
        args.append(residual)

    kern = functools.partial(_matmul_kernel, has_bias=bias is not None,
                             has_res=residual is not None, activation=activation)
    return pl.pallas_call(
        kern,
        out_shape=jax.ShapeDtypeStruct((M, N), out_dtype),
        grid=(M // tm, N // tn, K // tk),
        in_specs=in_specs,
        out_specs=pl.BlockSpec((tm, tn), lambda i, j, k: (i, j)),
        scratch_shapes=[pltpu.VMEM((tm, tn), jnp.float32)],
        compiler_params=pltpu.CompilerParams(
            dimension_semantics=("parallel", "parallel", "arbitrary"),
            vmem_limit_bytes=_VMEM_LIMIT),
    )(*args)


# ----------------- LayerNorm fused into the consuming matmul -------------

def _ln_matmul_kernel(x_ref, g_ref, bln_ref, w_ref, *rest, has_bias, activation):
    pos = 0
    b_ref = rest[pos] if has_bias else None
    pos += int(has_bias)
    o_ref, xn_ref = rest[pos], rest[pos + 1]

    # LayerNorm once per row block (j == 0), cached in VMEM for every N tile.
    @pl.when(pl.program_id(1) == 0)
    def _():
        x = x_ref[...].astype(jnp.float32)
        mu = jnp.mean(x, axis=-1, keepdims=True)
        var = jnp.mean(jnp.square(x - mu), axis=-1, keepdims=True)
        xn = (x - mu) * jax.lax.rsqrt(var + 1e-5)
        xn = xn * g_ref[...].astype(jnp.float32) + bln_ref[...].astype(jnp.float32)
        xn_ref[...] = xn.astype(xn_ref.dtype)

    y = jnp.dot(xn_ref[...], w_ref[...], preferred_element_type=jnp.float32)
    if has_bias:
        y = y + b_ref[...].astype(jnp.float32)
    if activation == "quick_gelu":
        y = y * jax.nn.sigmoid(1.702 * y)
    o_ref[...] = y.astype(o_ref.dtype)


def ln_matmul(x, g, b_ln, w, bias=None, activation=None,
              out_dtype=jnp.bfloat16, tm=512, tn=512):
    """y = act(LayerNorm(x) @ w + bias).  K is kept whole so LN statistics see
    the full row; LN is computed once per row block and reused across N."""
    M, K = x.shape
    N = w.shape[1]
    tm = _pick_tile(M, tm, 8)
    tn = _pick_tile(N, tn, 128)

    in_specs = [pl.BlockSpec((tm, K), lambda i, j: (i, 0)),
                pl.BlockSpec((1, K), lambda i, j: (0, 0)),
                pl.BlockSpec((1, K), lambda i, j: (0, 0)),
                pl.BlockSpec((K, tn), lambda i, j: (0, j))]
    args = [x, g.reshape(1, K), b_ln.reshape(1, K), w]
    if bias is not None:
        in_specs.append(pl.BlockSpec((1, tn), lambda i, j: (0, j)))
        args.append(bias.reshape(1, N))

    kern = functools.partial(_ln_matmul_kernel, has_bias=bias is not None,
                             activation=activation)
    return pl.pallas_call(
        kern,
        out_shape=jax.ShapeDtypeStruct((M, N), out_dtype),
        grid=(M // tm, N // tn),
        in_specs=in_specs,
        out_specs=pl.BlockSpec((tm, tn), lambda i, j: (i, j)),
        scratch_shapes=[pltpu.VMEM((tm, K), jnp.bfloat16)],
        compiler_params=pltpu.CompilerParams(
            dimension_semantics=("parallel", "arbitrary"),
            vmem_limit_bytes=_VMEM_LIMIT),
    )(*args)


# ------------- ln_pre with fused positional-embedding add ----------------

def _ln_pre_kernel(x_ref, pos_ref, g_ref, b_ref, o_ref):
    x = x_ref[...].astype(jnp.float32) + pos_ref[...].astype(jnp.float32)
    mu = jnp.mean(x, axis=-1, keepdims=True)
    var = jnp.mean(jnp.square(x - mu), axis=-1, keepdims=True)
    xn = (x - mu) * jax.lax.rsqrt(var + 1e-5)
    o_ref[...] = (xn * g_ref[...].astype(jnp.float32)
                  + b_ref[...].astype(jnp.float32)).astype(o_ref.dtype)


def ln_pre(x, pos, g, b, out_dtype=jnp.bfloat16, ts=256):
    """LayerNorm(x + pos) over the feature dim.  x: (B, S, D), pos: (S, D)."""
    B, S, D = x.shape
    ts = _pick_tile(S, ts, 8)
    return pl.pallas_call(
        _ln_pre_kernel,
        out_shape=jax.ShapeDtypeStruct((B, S, D), out_dtype),
        grid=(B, S // ts),
        in_specs=[pl.BlockSpec((None, ts, D), lambda bi, si: (bi, si, 0)),
                  pl.BlockSpec((ts, D), lambda bi, si: (si, 0)),
                  pl.BlockSpec((1, D), lambda bi, si: (0, 0)),
                  pl.BlockSpec((1, D), lambda bi, si: (0, 0))],
        out_specs=pl.BlockSpec((None, ts, D), lambda bi, si: (bi, si, 0)),
        compiler_params=pltpu.CompilerParams(
            dimension_semantics=("parallel", "parallel"),
            vmem_limit_bytes=_VMEM_LIMIT),
    )(x, pos, g.reshape(1, D), b.reshape(1, D))


# -------------------------- multi-head attention -------------------------

def _attention_kernel(q_ref, k_ref, v_ref, o_ref, *, scale, s_valid):
    # refs: (S, hb, hd) — relayout to head-leading inside VMEM (no HBM transpose)
    q = pltpu.einshape("shd->hsd", q_ref[...])
    k = pltpu.einshape("shd->hsd", k_ref[...])
    v = pltpu.einshape("shd->hsd", v_ref[...])
    S = q.shape[1]

    s = jnp.einsum("hqd,hkd->hqk", q, k,
                   preferred_element_type=jnp.float32) * scale
    if s_valid < S:                               # mask padded key columns
        key_ok = jax.lax.broadcasted_iota(jnp.int32, (1, 1, S), 2) < s_valid
        s = jnp.where(key_ok, s, -1e30)
    s = s - jnp.max(s, axis=-1, keepdims=True)
    p = jnp.exp(s)
    p = p * pl.reciprocal(jnp.sum(p, axis=-1, keepdims=True), approx=True)
    o = jnp.einsum("hqk,hkd->hqd", p.astype(v.dtype), v,
                   preferred_element_type=jnp.float32)        # (hb, S, hd)

    hb, _, hd = o.shape
    for h in range(hb):                           # static unroll: lane-sliced stores
        o_ref[:, h * hd:(h + 1) * hd] = o[h].astype(o_ref.dtype)


def attention(qkv, scale, s_valid):
    """qkv: (B, S, 3, H, hd) bf16 view of the QKV projection output.
    Returns (B, S, H*hd) bf16 with heads concatenated on the lane axis."""
    B, S, _, H, hd = qkv.shape
    hb = 8 if (H > 8 and H % 8 == 0) else H       # heads per grid step
    width = H * hd
    kern = functools.partial(_attention_kernel, scale=scale, s_valid=s_valid)

    def qkv_spec(sel):
        return pl.BlockSpec((None, S, None, hb, hd),
                            lambda bi, hi, sel=sel: (bi, 0, sel, hi, 0))

    return pl.pallas_call(
        kern,
        out_shape=jax.ShapeDtypeStruct((B, S, width), jnp.bfloat16),
        grid=(B, H // hb),
        in_specs=[qkv_spec(0), qkv_spec(1), qkv_spec(2)],
        out_specs=pl.BlockSpec((None, S, hb * hd), lambda bi, hi: (bi, 0, hi)),
        compiler_params=pltpu.CompilerParams(
            dimension_semantics=("parallel", "parallel"),
            vmem_limit_bytes=_VMEM_LIMIT),
    )(qkv, qkv, qkv)


# ----------------------- parameter init (synthetic) -----------------------

def init_params(key, *, in_ch, patch, width, heads, layers, mlp_dim, embed_dim):
    # matmul weights in bf16 (native MXU operand dtype); biases & LN params f32.
    def nrm(k, shape, dtype=jnp.bfloat16, scale=0.02):
        return (scale * jax.random.normal(k, shape)).astype(dtype)

    keys = iter(jax.random.split(key, 4 + 4 * layers))
    params = {
        "conv_w": nrm(next(keys), (in_ch * patch * patch, width)),   # bias=False
        "class_emb": nrm(next(keys), (width,), dtype=jnp.float32),
        "ln_pre_g": jnp.ones((width,), jnp.float32),
        "ln_pre_b": jnp.zeros((width,), jnp.float32),
        "ln_post_g": jnp.ones((width,), jnp.float32),
        "ln_post_b": jnp.zeros((width,), jnp.float32),
        "proj": nrm(next(keys), (width, embed_dim)),
        "blocks": [],
    }
    for _ in range(layers):
        params["blocks"].append({
            "ln1_g": jnp.ones((width,), jnp.float32),
            "ln1_b": jnp.zeros((width,), jnp.float32),
            "qkv_w": nrm(next(keys), (width, 3 * width)),
            "qkv_b": jnp.zeros((3 * width,), jnp.float32),
            "out_w": nrm(next(keys), (width, width)),
            "out_b": jnp.zeros((width,), jnp.float32),
            "ln2_g": jnp.ones((width,), jnp.float32),
            "ln2_b": jnp.zeros((width,), jnp.float32),
            "fc_w": nrm(next(keys), (width, mlp_dim)),
            "fc_b": jnp.zeros((mlp_dim,), jnp.float32),
            "proj_w": nrm(next(keys), (mlp_dim, width)),
            "proj_b": jnp.zeros((width,), jnp.float32),
        })
    return params


# ----------------------- forward pass (encode_image) -----------------------

def encode_image(params, image, *, patch, heads):
    B, C, H, W = image.shape
    gh, gw = H // patch, W // patch
    n_patch = gh * gw
    width = params["conv_w"].shape[1]

    # conv1 (kernel=stride=patch, no bias) as im2col + tiled Pallas matmul;
    # feature order (C, kh, kw) matches the PyTorch conv weight flatten order.
    patches = (image.reshape(B, C, gh, patch, gw, patch)
                    .transpose(0, 2, 4, 1, 3, 5)
                    .reshape(B * n_patch, C * patch * patch)).astype(jnp.bfloat16)
    x = matmul(patches, params["conv_w"]).reshape(B, n_patch, width)

    # class token; pad S to a sublane multiple so every downstream matmul sees
    # a well-tileable M = B*S_pad (real CLIP S=197/257 is prime). Padded rows
    # are masked in attention (keys) and discarded at the end.
    S = n_patch + 1
    S_pad = ((S + 7) // 8) * 8
    cls = jnp.broadcast_to(params["class_emb"].astype(jnp.bfloat16)[None, None, :],
                           (B, 1, width))
    x = jnp.concatenate([cls, x], axis=1)                         # (B, S, width)
    x = jnp.pad(x, ((0, 0), (0, S_pad - S), (0, 0)))
    pos = jnp.pad(params["pos_emb"].astype(jnp.float32),
                  ((0, S_pad - S), (0, 0)))                       # (S_pad, width)

    # ln_pre with the positional-embedding add fused in -> bf16 residual stream
    x = ln_pre(x, pos, params["ln_pre_g"], params["ln_pre_b"])    # (B,S_pad,width)

    head_dim = width // heads
    scale = 1.0 / math.sqrt(head_dim)
    M = B * S_pad

    for blk in params["blocks"]:
        x_flat = x.reshape(M, width)

        # ---- MHA: ln1 fused into QKV projection; attention consumes the
        #      (B, S, 3, H, hd) view directly (no HBM head transposes);
        #      residual add fused into the out-projection matmul.
        qkv = ln_matmul(x_flat, blk["ln1_g"], blk["ln1_b"],
                        blk["qkv_w"], blk["qkv_b"])
        qkv = qkv.reshape(B, S_pad, 3, heads, head_dim)           # free view
        a = attention(qkv, scale, s_valid=S)                      # (B,S_pad,width)
        x_flat = matmul(a.reshape(M, width), blk["out_w"],
                        bias=blk["out_b"], residual=x_flat)

        # ---- MLP: ln2 fused into c_fc (+QuickGELU), residual fused into c_proj
        h = ln_matmul(x_flat, blk["ln2_g"], blk["ln2_b"],
                      blk["fc_w"], blk["fc_b"], activation="quick_gelu")
        x_flat = matmul(h, blk["proj_w"], bias=blk["proj_b"], residual=x_flat)

        x = x_flat.reshape(B, S_pad, width)

    # ln_post on the class token fused with the visual projection (no bias).
    cls_tok = x[:, 0, :]                                          # (B, width)
    out = ln_matmul(cls_tok, params["ln_post_g"], params["ln_post_b"],
                    params["proj"], out_dtype=jnp.float32)
    return out                                                    # (B, embed_dim)


# ----------------------- main -----------------------

if __name__ == "__main__":
    # small ViT config consistent with a CLIP image encoder
    B, C, H, W = 2, 3, 16, 16
    PATCH, WIDTH, HEADS, LAYERS, EMBED = 8, 32, 4, 2, 16
    MLP = 4 * WIDTH
    SEQ = (H // PATCH) * (W // PATCH) + 1

    key = jax.random.PRNGKey(0)
    k_img, k_par, k_pos = jax.random.split(key, 3)
    image = jax.random.normal(k_img, (B, C, H, W), dtype=jnp.float32)

    params = init_params(k_par, in_ch=C, patch=PATCH, width=WIDTH, heads=HEADS,
                         layers=LAYERS, mlp_dim=MLP, embed_dim=EMBED)
    params["pos_emb"] = (0.02 * jax.random.normal(k_pos, (SEQ, WIDTH))
                         ).astype(jnp.float32)

    fwd = jax.jit(functools.partial(encode_image, patch=PATCH, heads=HEADS))
    out = fwd(params, image)
    out = jax.block_until_ready(out)
    assert out.shape == (B, EMBED) and out.dtype == jnp.float32
    print("KERNEL_OK")
</pallas_src>

<mosaic_0001>
module attributes {stable_mosaic.version = 11 : i64} {
  func.func @_matmul_kernel(%arg0: i32, %arg1: i32, %arg2: i32, %arg3: memref<8x192xbf16, #tpu.memory_space<vmem>>, %arg4: memref<192x32xbf16, #tpu.memory_space<vmem>>, %arg5: memref<8x32xbf16, #tpu.memory_space<vmem>>, %arg6: memref<8x32xf32, #tpu.memory_space<vmem>>) attributes {dimension_semantics = [#tpu.dimension_semantics<parallel>, #tpu.dimension_semantics<parallel>, #tpu.dimension_semantics<arbitrary>], iteration_bounds = array<i64: 1, 1, 1>, scalar_prefetch = 0 : i64, scratch_operands = 1 : i64, tpu.core_type = #tpu.core_type<tc>, window_params = [{transform_indices = @transform_0, window_bounds = array<i64: 8, 192>}, {transform_indices = @transform_1, window_bounds = array<i64: 192, 32>}, {transform_indices = @transform_2, window_bounds = array<i64: 8, 32>}]} {
    %c0_i32 = arith.constant 0 : i32
    %0 = arith.cmpi eq, %arg2, %c0_i32 : i32
    %1 = arith.extui %0 : i1 to i32
    %c0_i32_0 = arith.constant 0 : i32
    %2 = arith.cmpi ne, %1, %c0_i32_0 : i32
    scf.if %2 {
      %cst_10 = arith.constant 0.000000e+00 : f32
      %12 = vector.broadcast %cst_10 : f32 to vector<8x32xf32>
      %c0_11 = arith.constant 0 : index
      %c0_12 = arith.constant 0 : index
      %13 = vector.load %arg6[%c0_11, %c0_12] : memref<8x32xf32, #tpu.memory_space<vmem>>, vector<8x32xf32>
      tpu.vector_store %arg6[%c0_11, %c0_12], %12 {strides = array<i32>} : memref<8x32xf32, #tpu.memory_space<vmem>>, vector<8x32xf32>,
    } else {
    }
    %c0 = arith.constant 0 : index
    %c0_1 = arith.constant 0 : index
    %3 = vector.load %arg6[%c0, %c0_1] : memref<8x32xf32, #tpu.memory_space<vmem>>, vector<8x32xf32>
    %c0_2 = arith.constant 0 : index
    %c0_3 = arith.constant 0 : index
    %4 = vector.load %arg3[%c0_2, %c0_3] : memref<8x192xbf16, #tpu.memory_space<vmem>>, vector<8x192xbf16>
    %c0_4 = arith.constant 0 : index
    %c0_5 = arith.constant 0 : index
    %5 = vector.load %arg4[%c0_4, %c0_5] : memref<192x32xbf16, #tpu.memory_space<vmem>>, vector<192x32xbf16>
    %cst = arith.constant dense<0.000000e+00> : vector<8x32xf32>
    %6 = tpu.matmul %4, %5, %cst {dimension_numbers = #tpu.dot_dimension_numbers<[1], [0], [0], [1], [0, 0, 1, 1], [], []>} : vector<8x192xbf16>, vector<192x32xbf16>, vector<8x32xf32> -> vector<8x32xf32>
    %7 = arith.addf %3, %6 : vector<8x32xf32>
    %c0_6 = arith.constant 0 : index
    %c0_7 = arith.constant 0 : index
    %8 = vector.load %arg6[%c0_6, %c0_7] : memref<8x32xf32, #tpu.memory_space<vmem>>, vector<8x32xf32>
    tpu.vector_store %arg6[%c0_6, %c0_7], %7 {strides = array<i32>} : memref<8x32xf32, #tpu.memory_space<vmem>>, vector<8x32xf32>,
    %c0_i32_8 = arith.constant 0 : i32
    %9 = arith.cmpi eq, %arg2, %c0_i32_8 : i32
    %10 = arith.extui %9 : i1 to i32
    %c0_i32_9 = arith.constant 0 : i32
    %11 = arith.cmpi ne, %10, %c0_i32_9 : i32
    scf.if %11 {
      %c0_10 = arith.constant 0 : index
      %c0_11 = arith.constant 0 : index
      %12 = vector.load %arg6[%c0_10, %c0_11] : memref<8x32xf32, #tpu.memory_space<vmem>>, vector<8x32xf32>
      %13 = arith.truncf %12 : vector<8x32xf32> to vector<8x32xbf16>
      %c0_12 = arith.constant 0 : index
      %c0_13 = arith.constant 0 : index
      %14 = vector.load %arg5[%c0_12, %c0_13] : memref<8x32xbf16, #tpu.memory_space<vmem>>, vector<8x32xbf16>
      tpu.vector_store %arg5[%c0_12, %c0_13], %13 {strides = array<i32>} : memref<8x32xbf16, #tpu.memory_space<vmem>>, vector<8x32xbf16>,
    } else {
    }
    return
  }
  func.func @transform_0(%arg0: i32, %arg1: i32, %arg2: i32) -> (i32, i32) {
    %c0_i32 = arith.constant 0 : i32
    return %arg0, %arg2 : i32, i32
  }
  func.func @transform_1(%arg0: i32, %arg1: i32, %arg2: i32) -> (i32, i32) {
    %c0_i32 = arith.constant 0 : i32
    return %arg2, %arg1 : i32, i32
  }
  func.func @transform_2(%arg0: i32, %arg1: i32, %arg2: i32) -> (i32, i32) {
    %c0_i32 = arith.constant 0 : i32
    return %arg0, %arg1 : i32, i32
  }
}

module attributes {stable_mosaic.version = 11 : i64} {
  func.func @_ln_matmul_kernel(%arg0: i32, %arg1: i32, %arg2: memref<16x32xbf16, #tpu.memory_space<vmem>>, %arg3: memref<1x32xf32, #tpu.memory_space<vmem>>, %arg4: memref<1x32xf32, #tpu.memory_space<vmem>>, %arg5: memref<32x96xbf16, #tpu.memory_space<vmem>>, %arg6: memref<1x96xf32, #tpu.memory_space<vmem>>, %arg7: memref<16x96xbf16, #tpu.memory_space<vmem>>, %arg8: memref<16x32xbf16, #tpu.memory_space<vmem>>) attributes {dimension_semantics = [#tpu.dimension_semantics<parallel>, #tpu.dimension_semantics<arbitrary>], iteration_bounds = array<i64: 1, 1>, scalar_prefetch = 0 : i64, scratch_operands = 1 : i64, tpu.core_type = #tpu.core_type<tc>, window_params = [{transform_indices = @transform_0, window_bounds = array<i64: 16, 32>}, {pipeline_mode = #tpu.pipeline_mode<synchronous>, transform_indices = @transform_1, window_bounds = array<i64: 1, 32>}, {pipeline_mode = #tpu.pipeline_mode<synchronous>, transform_indices = @transform_2, window_bounds = array<i64: 1, 32>}, {transform_indices = @transform_3, window_bounds = array<i64: 32, 96>}, {transform_indices = @transform_4, window_bounds = array<i64: 1, 96>}, {transform_indices = @transform_5, window_bounds = array<i64: 16, 96>}]} {
    %c0_i32 = arith.constant 0 : i32
    %0 = arith.cmpi eq, %arg1, %c0_i32 : i32
    %1 = arith.extui %0 : i1 to i32
    %c0_i32_0 = arith.constant 0 : i32
    %2 = arith.cmpi ne, %1, %c0_i32_0 : i32
    scf.if %2 {
      %c0_8 = arith.constant 0 : index
      %c0_9 = arith.constant 0 : index
      %11 = vector.load %arg2[%c0_8, %c0_9] : memref<16x32xbf16, #tpu.memory_space<vmem>>, vector<16x32xbf16>
      %12 = arith.extf %11 : vector<16x32xbf16> to vector<16x32xf32>
      %cst_10 = arith.constant dense<0.000000e+00> : vector<16xf32>
      %13 = vector.multi_reduction <add>, %12, %cst_10 [1] : vector<16x32xf32> to vector<16xf32>
      %14 = vector.shape_cast %13 : vector<16xf32> to vector<16x1xf32>
      %cst_11 = arith.constant 3.200000e+01 : f32
      %15 = vector.broadcast %cst_11 : f32 to vector<16x1xf32>
      %16 = arith.divf %14, %15 : vector<16x1xf32>
      %17 = vector.broadcast %16 : vector<16x1xf32> to vector<16x32xf32>
      %18 = arith.subf %12, %17 : vector<16x32xf32>
      %19 = arith.mulf %18, %18 : vector<16x32xf32>
      %cst_12 = arith.constant dense<0.000000e+00> : vector<16xf32>
      %20 = vector.multi_reduction <add>, %19, %cst_12 [1] : vector<16x32xf32> to vector<16xf32>
      %21 = vector.shape_cast %20 : vector<16xf32> to vector<16x1xf32>
      %cst_13 = arith.constant 3.200000e+01 : f32
      %22 = vector.broadcast %cst_13 : f32 to vector<16x1xf32>
      %23 = arith.divf %21, %22 : vector<16x1xf32>
      %24 = vector.broadcast %16 : vector<16x1xf32> to vector<16x32xf32>
      %25 = arith.subf %12, %24 : vector<16x32xf32>
      %cst_14 = arith.constant 9.99999974E-6 : f32
      %26 = vector.broadcast %cst_14 : f32 to vector<16x1xf32>
      %27 = arith.addf %23, %26 : vector<16x1xf32>
      %28 = math.rsqrt %27 : vector<16x1xf32>
      %29 = vector.broadcast %28 : vector<16x1xf32> to vector<16x32xf32>
      %30 = arith.mulf %25, %29 : vector<16x32xf32>
      %c0_15 = arith.constant 0 : index
      %c0_16 = arith.constant 0 : index
      %31 = vector.load %arg3[%c0_15, %c0_16] : memref<1x32xf32, #tpu.memory_space<vmem>>, vector<1x32xf32>
      %32 = vector.broadcast %31 : vector<1x32xf32> to vector<16x32xf32>
      %33 = arith.mulf %30, %32 : vector<16x32xf32>
      %c0_17 = arith.constant 0 : index
      %c0_18 = arith.constant 0 : index
      %34 = vector.load %arg4[%c0_17, %c0_18] : memref<1x32xf32, #tpu.memory_space<vmem>>, vector<1x32xf32>
      %35 = vector.broadcast %34 : vector<1x32xf32> to vector<16x32xf32>
      %36 = arith.addf %33, %35 : vector<16x32xf32>
      %37 = arith.truncf %36 : vector<16x32xf32> to vector<16x32xbf16>
      %c0_19 = arith.constant 0 : index
      %c0_20 = arith.constant 0 : index
      %38 = vector.load %arg8[%c0_19, %c0_20] : memref<16x32xbf16, #tpu.memory_space<vmem>>, vector<16x32xbf16>
      tpu.vector_store %arg8[%c0_19, %c0_20], %37 {strides = array<i32>} : memref<16x32xbf16, #tpu.memory_space<vmem>>, vector<16x32xbf16>,
    } else {
    }
    %c0 = arith.constant 0 : index
    %c0_1 = arith.constant 0 : index
    %3 = vector.load %arg8[%c0, %c0_1] : memref<16x32xbf16, #tpu.memory_space<vmem>>, vector<16x32xbf16>
    %c0_2 = arith.constant 0 : index
    %c0_3 = arith.constant 0 : index
    %4 = vector.load %arg5[%c0_2, %c0_3] : memref<32x96xbf16, #tpu.memory_space<vmem>>, vector<32x96xbf16>
    %cst = arith.constant dense<0.000000e+00> : vector<16x96xf32>
    %5 = tpu.matmul %3, %4, %cst {dimension_numbers = #tpu.dot_dimension_numbers<[1], [0], [0], [1], [0, 0, 1, 1], [], []>} : vector<16x32xbf16>, vector<32x96xbf16>, vector<16x96xf32> -> vector<16x96xf32>
    %c0_4 = arith.constant 0 : index
    %c0_5 = arith.constant 0 : index
    %6 = vector.load %arg6[%c0_4, %c0_5] : memref<1x96xf32, #tpu.memory_space<vmem>>, vector<1x96xf32>
    %7 = vector.broadcast %6 : vector<1x96xf32> to vector<16x96xf32>
    %8 = arith.addf %5, %7 : vector<16x96xf32>
    %9 = arith.truncf %8 : vector<16x96xf32> to vector<16x96xbf16>
    %c0_6 = arith.constant 0 : index
    %c0_7 = arith.constant 0 : index
    %10 = vector.load %arg7[%c0_6, %c0_7] : memref<16x96xbf16, #tpu.memory_space<vmem>>, vector<16x96xbf16>
    tpu.vector_store %arg7[%c0_6, %c0_7], %9 {strides = array<i32>} : memref<16x96xbf16, #tpu.memory_space<vmem>>, vector<16x96xbf16>,
    return
  }
  func.func @transform_0(%arg0: i32, %arg1: i32) -> (i32, i32) {
    %c0_i32 = arith.constant 0 : i32
    %c0_i32_0 = arith.constant 0 : i32
    return %arg0, %c0_i32 : i32, i32
  }
  func.func @transform_1(%arg0: i32, %arg1: i32) -> (i32, i32) {
    %c0_i32 = arith.constant 0 : i32
    %c0_i32_0 = arith.constant 0 : i32
    %c0_i32_1 = arith.constant 0 : i32
    return %c0_i32, %c0_i32_0 : i32, i32
  }
  func.func @transform_2(%arg0: i32, %arg1: i32) -> (i32, i32) {
    %c0_i32 = arith.constant 0 : i32
    %c0_i32_0 = arith.constant 0 : i32
    %c0_i32_1 = arith.constant 0 : i32
    return %c0_i32, %c0_i32_0 : i32, i32
  }
  func.func @transform_3(%arg0: i32, %arg1: i32) -> (i32, i32) {
    %c0_i32 = arith.constant 0 : i32
    %c0_i32_0 = arith.constant 0 : i32
    return %c0_i32, %arg1 : i32, i32
  }
  func.func @transform_4(%arg0: i32, %arg1: i32) -> (i32, i32) {
    %c0_i32 = arith.constant 0 : i32
    %c0_i32_0 = arith.constant 0 : i32
    return %c0_i32, %arg1 : i32, i32
  }
  func.func @transform_5(%arg0: i32, %arg1: i32) -> (i32, i32) {
    %c0_i32 = arith.constant 0 : i32
    return %arg0, %arg1 : i32, i32
  }
}

module attributes {stable_mosaic.version = 11 : i64} {
  func.func @_ln_pre_kernel(%arg0: i32, %arg1: i32, %arg2: memref<1x8x32xbf16, #tpu.memory_space<vmem>>, %arg3: memref<8x32xf32, #tpu.memory_space<vmem>>, %arg4: memref<1x32xf32, #tpu.memory_space<vmem>>, %arg5: memref<1x32xf32, #tpu.memory_space<vmem>>, %arg6: memref<1x8x32xbf16, #tpu.memory_space<vmem>>) attributes {dimension_semantics = [#tpu.dimension_semantics<parallel>, #tpu.dimension_semantics<parallel>], iteration_bounds = array<i64: 2, 1>, scalar_prefetch = 0 : i64, scratch_operands = 0 : i64, tpu.core_type = #tpu.core_type<tc>, window_params = [{transform_indices = @transform_0, window_bounds = array<i64: 1, 8, 32>}, {transform_indices = @transform_1, window_bounds = array<i64: 8, 32>}, {pipeline_mode = #tpu.pipeline_mode<synchronous>, transform_indices = @transform_2, window_bounds = array<i64: 1, 32>}, {pipeline_mode = #tpu.pipeline_mode<synchronous>, transform_indices = @transform_3, window_bounds = array<i64: 1, 32>}, {transform_indices = @transform_4, window_bounds = array<i64: 1, 8, 32>}]} {
    %c0 = arith.constant 0 : index
    %c0_0 = arith.constant 0 : index
    %c0_1 = arith.constant 0 : index
    %0 = vector.load %arg2[%c0, %c0_0, %c0_1] : memref<1x8x32xbf16, #tpu.memory_space<vmem>>, vector<1x8x32xbf16>
    %1 = vector.shape_cast %0 : vector<1x8x32xbf16> to vector<8x32xbf16>
    %2 = arith.extf %1 : vector<8x32xbf16> to vector<8x32xf32>
    %c0_2 = arith.constant 0 : index
    %c0_3 = arith.constant 0 : index
    %3 = vector.load %arg3[%c0_2, %c0_3] : memref<8x32xf32, #tpu.memory_space<vmem>>, vector<8x32xf32>
    %4 = arith.addf %2, %3 : vector<8x32xf32>
    %cst = arith.constant dense<0.000000e+00> : vector<8xf32>
    %5 = vector.multi_reduction <add>, %4, %cst [1] : vector<8x32xf32> to vector<8xf32>
    %6 = vector.shape_cast %5 : vector<8xf32> to vector<8x1xf32>
    %cst_4 = arith.constant 3.200000e+01 : f32
    %7 = vector.broadcast %cst_4 : f32 to vector<8x1xf32>
    %8 = arith.divf %6, %7 : vector<8x1xf32>
    %9 = vector.broadcast %8 : vector<8x1xf32> to vector<8x32xf32>
    %10 = arith.subf %4, %9 : vector<8x32xf32>
    %11 = arith.mulf %10, %10 : vector<8x32xf32>
    %cst_5 = arith.constant dense<0.000000e+00> : vector<8xf32>
    %12 = vector.multi_reduction <add>, %11, %cst_5 [1] : vector<8x32xf32> to vector<8xf32>
    %13 = vector.shape_cast %12 : vector<8xf32> to vector<8x1xf32>
    %cst_6 = arith.constant 3.200000e+01 : f32
    %14 = vector.broadcast %cst_6 : f32 to vector<8x1xf32>
    %15 = arith.divf %13, %14 : vector<8x1xf32>
    %16 = vector.broadcast %8 : vector<8x1xf32> to vector<8x32xf32>
    %17 = arith.subf %4, %16 : vector<8x32xf32>
    %cst_7 = arith.constant 9.99999974E-6 : f32
    %18 = vector.broadcast %cst_7 : f32 to vector<8x1xf32>
    %19 = arith.addf %15, %18 : vector<8x1xf32>
    %20 = math.rsqrt %19 : vector<8x1xf32>
    %21 = vector.broadcast %20 : vector<8x1xf32> to vector<8x32xf32>
    %22 = arith.mulf %17, %21 : vector<8x32xf32>
    %c0_8 = arith.constant 0 : index
    %c0_9 = arith.constant 0 : index
    %23 = vector.load %arg4[%c0_8, %c0_9] : memref<1x32xf32, #tpu.memory_space<vmem>>, vector<1x32xf32>
    %24 = vector.broadcast %23 : vector<1x32xf32> to vector<8x32xf32>
    %25 = arith.mulf %22, %24 : vector<8x32xf32>
    %c0_10 = arith.constant 0 : index
    %c0_11 = arith.constant 0 : index
    %26 = vector.load %arg5[%c0_10, %c0_11] : memref<1x32xf32, #tpu.memory_space<vmem>>, vector<1x32xf32>
    %27 = vector.broadcast %26 : vector<1x32xf32> to vector<8x32xf32>
    %28 = arith.addf %25, %27 : vector<8x32xf32>
    %29 = arith.truncf %28 : vector<8x32xf32> to vector<8x32xbf16>
    %c0_12 = arith.constant 0 : index
    %c0_13 = arith.constant 0 : index
    %c0_14 = arith.constant 0 : index
    %30 = vector.load %arg6[%c0_12, %c0_13, %c0_14] : memref<1x8x32xbf16, #tpu.memory_space<vmem>>, vector<1x8x32xbf16>
    %31 = vector.shape_cast %30 : vector<1x8x32xbf16> to vector<8x32xbf16>
    %32 = vector.shape_cast %29 : vector<8x32xbf16> to vector<1x8x32xbf16>
    tpu.vector_store %arg6[%c0_12, %c0_13, %c0_14], %32 {strides = array<i32>} : memref<1x8x32xbf16, #tpu.memory_space<vmem>>, vector<1x8x32xbf16>,
    return
  }
  func.func @transform_0(%arg0: i32, %arg1: i32) -> (i32, i32, i32) {
    %c0_i32 = arith.constant 0 : i32
    %c0_i32_0 = arith.constant 0 : i32
    return %arg0, %arg1, %c0_i32 : i32, i32, i32
  }
  func.func @transform_1(%arg0: i32, %arg1: i32) -> (i32, i32) {
    %c0_i32 = arith.constant 0 : i32
    %c0_i32_0 = arith.constant 0 : i32
    return %arg1, %c0_i32 : i32, i32
  }
  func.func @transform_2(%arg0: i32, %arg1: i32) -> (i32, i32) {
    %c0_i32 = arith.constant 0 : i32
    %c0_i32_0 = arith.constant 0 : i32
    %c0_i32_1 = arith.constant 0 : i32
    return %c0_i32, %c0_i32_0 : i32, i32
  }
  func.func @transform_3(%arg0: i32, %arg1: i32) -> (i32, i32) {
    %c0_i32 = arith.constant 0 : i32
    %c0_i32_0 = arith.constant 0 : i32
    %c0_i32_1 = arith.constant 0 : i32
    return %c0_i32, %c0_i32_0 : i32, i32
  }
  func.func @transform_4(%arg0: i32, %arg1: i32) -> (i32, i32, i32) {
    %c0_i32 = arith.constant 0 : i32
    %c0_i32_0 = arith.constant 0 : i32
    return %arg0, %arg1, %c0_i32 : i32, i32, i32
  }
}

module attributes {stable_mosaic.version = 11 : i64} {
  func.func @_attention_kernel(%arg0: i32, %arg1: i32, %arg2: memref<1x8x1x4x8xbf16, #tpu.memory_space<vmem>>, %arg3: memref<1x8x1x4x8xbf16, #tpu.memory_space<vmem>>, %arg4: memref<1x8x1x4x8xbf16, #tpu.memory_space<vmem>>, %arg5: memref<1x8x32xbf16, #tpu.memory_space<vmem>>) attributes {dimension_semantics = [#tpu.dimension_semantics<parallel>, #tpu.dimension_semantics<parallel>], iteration_bounds = array<i64: 2, 1>, scalar_prefetch = 0 : i64, scratch_operands = 0 : i64, tpu.core_type = #tpu.core_type<tc>, window_params = [{transform_indices = @transform_0, window_bounds = array<i64: 1, 8, 1, 4, 8>}, {transform_indices = @transform_1, window_bounds = array<i64: 1, 8, 1, 4, 8>}, {transform_indices = @transform_2, window_bounds = array<i64: 1, 8, 1, 4, 8>}, {transform_indices = @transform_3, window_bounds = array<i64: 1, 8, 32>}]} {
    %c0 = arith.constant 0 : index
    %c0_0 = arith.constant 0 : index
    %c0_1 = arith.constant 0 : index
    %c0_2 = arith.constant 0 : index
    %c0_3 = arith.constant 0 : index
    %0 = vector.load %arg2[%c0, %c0_0, %c0_1, %c0_2, %c0_3] : memref<1x8x1x4x8xbf16, #tpu.memory_space<vmem>>, vector<1x8x1x4x8xbf16>
    %1 = vector.shape_cast %0 : vector<1x8x1x4x8xbf16> to vector<8x4x8xbf16>
    %2 = tpu.transpose %1, [1, 0, 2] : vector<8x4x8xbf16> -> vector<4x8x8xbf16>
    %c0_4 = arith.constant 0 : index
    %c0_5 = arith.constant 0 : index
    %c0_6 = arith.constant 0 : index
    %c0_7 = arith.constant 0 : index
    %c0_8 = arith.constant 0 : index
    %3 = vector.load %arg3[%c0_4, %c0_5, %c0_6, %c0_7, %c0_8] : memref<1x8x1x4x8xbf16, #tpu.memory_space<vmem>>, vector<1x8x1x4x8xbf16>
    %4 = vector.shape_cast %3 : vector<1x8x1x4x8xbf16> to vector<8x4x8xbf16>
    %5 = tpu.transpose %4, [1, 0, 2] : vector<8x4x8xbf16> -> vector<4x8x8xbf16>
    %c0_9 = arith.constant 0 : index
    %c0_10 = arith.constant 0 : index
    %c0_11 = arith.constant 0 : index
    %c0_12 = arith.constant 0 : index
    %c0_13 = arith.constant 0 : index
    %6 = vector.load %arg4[%c0_9, %c0_10, %c0_11, %c0_12, %c0_13] : memref<1x8x1x4x8xbf16, #tpu.memory_space<vmem>>, vector<1x8x1x4x8xbf16>
    %7 = vector.shape_cast %6 : vector<1x8x1x4x8xbf16> to vector<8x4x8xbf16>
    %8 = tpu.transpose %7, [1, 0, 2] : vector<8x4x8xbf16> -> vector<4x8x8xbf16>
    "tpu.trace_start"() <{level = 10 : i32, message = "hqd,hkd->hqk"}> : () -> ()
    %cst = arith.constant dense<0.000000e+00> : vector<4x8x8xf32>
    %9 = tpu.matmul %2, %5, %cst {dimension_numbers = #tpu.dot_dimension_numbers<[2], [2], [1], [1], [0, 0, 0, 1, 1, 1], [0], [0]>} : vector<4x8x8xbf16>, vector<4x8x8xbf16>, vector<4x8x8xf32> -> vector<4x8x8xf32>
    "tpu.trace_stop"() : () -> ()
    %cst_14 = arith.constant 0.353553385 : f32
    %10 = vector.broadcast %cst_14 : f32 to vector<4x8x8xf32>
    %11 = arith.mulf %9, %10 : vector<4x8x8xf32>
    %12 = tpu.iota {dimensions = array<i32: 2>} : vector<1x1x8xi32>
    %c5_i32 = arith.constant 5 : i32
    %13 = vector.broadcast %c5_i32 : i32 to vector<1x1x8xi32>
    %14 = arith.cmpi slt, %12, %13 : vector<1x1x8xi32>
    %cst_15 = arith.constant -1.000000e+30 : f32
    %15 = vector.shape_cast %14 : vector<1x1x8xi1> to vector<1x1x8xi1>
    %16 = vector.broadcast %15 : vector<1x1x8xi1> to vector<4x8x8xi1>
    %17 = vector.broadcast %cst_15 : f32 to vector<4x8x8xf32>
    %18 = arith.select %16, %11, %17 : vector<4x8x8xi1>, vector<4x8x8xf32>
    %cst_16 = arith.constant dense<0xFF800000> : vector<4x8xf32>
    %19 = vector.multi_reduction <maximumf>, %18, %cst_16 [2] : vector<4x8x8xf32> to vector<4x8xf32>
    %20 = vector.shape_cast %19 : vector<4x8xf32> to vector<4x8x1xf32>
    %21 = vector.broadcast %20 : vector<4x8x1xf32> to vector<4x8x8xf32>
    %22 = arith.subf %18, %21 : vector<4x8x8xf32>
    %23 = math.exp %22 : vector<4x8x8xf32>
    %cst_17 = arith.constant dense<0.000000e+00> : vector<4x8xf32>
    %24 = vector.multi_reduction <add>, %23, %cst_17 [2] : vector<4x8x8xf32> to vector<4x8xf32>
    %25 = vector.shape_cast %24 : vector<4x8xf32> to vector<4x8x1xf32>
    %26 = tpu.reciprocal %25 {approx = true} : vector<4x8x1xf32> -> vector<4x8x1xf32>
    %27 = vector.broadcast %26 : vector<4x8x1xf32> to vector<4x8x8xf32>
    %28 = arith.mulf %23, %27 : vector<4x8x8xf32>
    %29 = arith.truncf %28 : vector<4x8x8xf32> to vector<4x8x8xbf16>
    "tpu.trace_start"() <{level = 10 : i32, message = "hqk,hkd->hqd"}> : () -> ()
    %cst_18 = arith.constant dense<0.000000e+00> : vector<4x8x8xf32>
    %30 = tpu.matmul %29, %8, %cst_18 {dimension_numbers = #tpu.dot_dimension_numbers<[2], [1], [1], [2], [0, 0, 0, 1, 1, 2], [0], [0]>} : vector<4x8x8xbf16>, vector<4x8x8xbf16>, vector<4x8x8xf32> -> vector<4x8x8xf32>
    "tpu.trace_stop"() : () -> ()
    %31 = vector.extract_strided_slice %30 {offsets = [0, 0, 0], sizes = [1, 8, 8], strides = [1, 1, 1]} : vector<4x8x8xf32> to vector<1x8x8xf32>
    %32 = vector.shape_cast %31 : vector<1x8x8xf32> to vector<8x8xf32>
    %33 = arith.truncf %32 : vector<8x8xf32> to vector<8x8xbf16>
    %c0_19 = arith.constant 0 : index
    %c0_20 = arith.constant 0 : index
    %c0_21 = arith.constant 0 : index
    %34 = vector.load %arg5[%c0_19, %c0_20, %c0_21] : memref<1x8x32xbf16, #tpu.memory_space<vmem>>, vector<1x8x8xbf16>
    %35 = vector.shape_cast %34 : vector<1x8x8xbf16> to vector<8x8xbf16>
    %36 = vector.shape_cast %33 : vector<8x8xbf16> to vector<1x8x8xbf16>
    tpu.vector_store %arg5[%c0_19, %c0_20, %c0_21], %36 {strides = array<i32>} : memref<1x8x32xbf16, #tpu.memory_space<vmem>>, vector<1x8x8xbf16>,
    %37 = vector.extract_strided_slice %30 {offsets = [1, 0, 0], sizes = [1, 8, 8], strides = [1, 1, 1]} : vector<4x8x8xf32> to vector<1x8x8xf32>
    %38 = vector.shape_cast %37 : vector<1x8x8xf32> to vector<8x8xf32>
    %39 = arith.truncf %38 : vector<8x8xf32> to vector<8x8xbf16>
    %c0_22 = arith.constant 0 : index
    %c0_23 = arith.constant 0 : index
    %c8 = arith.constant 8 : index
    %40 = vector.load %arg5[%c0_22, %c0_23, %c8] : memref<1x8x32xbf16, #tpu.memory_space<vmem>>, vector<1x8x8xbf16>
    %41 = vector.shape_cast %40 : vector<1x8x8xbf16> to vector<8x8xbf16>
    %42 = vector.shape_cast %39 : vector<8x8xbf16> to vector<1x8x8xbf16>
    tpu.vector_store %arg5[%c0_22, %c0_23, %c8], %42 {strides = array<i32>} : memref<1x8x32xbf16, #tpu.memory_space<vmem>>, vector<1x8x8xbf16>,
    %43 = vector.extract_strided_slice %30 {offsets = [2, 0, 0], sizes = [1, 8, 8], strides = [1, 1, 1]} : vector<4x8x8xf32> to vector<1x8x8xf32>
    %44 = vector.shape_cast %43 : vector<1x8x8xf32> to vector<8x8xf32>
    %45 = arith.truncf %44 : vector<8x8xf32> to vector<8x8xbf16>
    %c0_24 = arith.constant 0 : index
    %c0_25 = arith.constant 0 : index
    %c16 = arith.constant 16 : index
    %46 = vector.load %arg5[%c0_24, %c0_25, %c16] : memref<1x8x32xbf16, #tpu.memory_space<vmem>>, vector<1x8x8xbf16>
    %47 = vector.shape_cast %46 : vector<1x8x8xbf16> to vector<8x8xbf16>
    %48 = vector.shape_cast %45 : vector<8x8xbf16> to vector<1x8x8xbf16>
    tpu.vector_store %arg5[%c0_24, %c0_25, %c16], %48 {strides = array<i32>} : memref<1x8x32xbf16, #tpu.memory_space<vmem>>, vector<1x8x8xbf16>,
    %49 = vector.extract_strided_slice %30 {offsets = [3, 0, 0], sizes = [1, 8, 8], strides = [1, 1, 1]} : vector<4x8x8xf32> to vector<1x8x8xf32>
    %50 = vector.shape_cast %49 : vector<1x8x8xf32> to vector<8x8xf32>
    %51 = arith.truncf %50 : vector<8x8xf32> to vector<8x8xbf16>
    %c0_26 = arith.constant 0 : index
    %c0_27 = arith.constant 0 : index
    %c24 = arith.constant 24 : index
    %52 = vector.load %arg5[%c0_26, %c0_27, %c24] : memref<1x8x32xbf16, #tpu.memory_space<vmem>>, vector<1x8x8xbf16>
    %53 = vector.shape_cast %52 : vector<1x8x8xbf16> to vector<8x8xbf16>
    %54 = vector.shape_cast %51 : vector<8x8xbf16> to vector<1x8x8xbf16>
    tpu.vector_store %arg5[%c0_26, %c0_27, %c24], %54 {strides = array<i32>} : memref<1x8x32xbf16, #tpu.memory_space<vmem>>, vector<1x8x8xbf16>,
    return
  }
  func.func @transform_0(%arg0: i32, %arg1: i32) -> (i32, i32, i32, i32, i32) {
    %c0_i32 = arith.constant 0 : i32
    %c0_i32_0 = arith.constant 0 : i32
    %c0_i32_1 = arith.constant 0 : i32
    %c0_i32_2 = arith.constant 0 : i32
    return %arg0, %c0_i32, %c0_i32_0, %arg1, %c0_i32_1 : i32, i32, i32, i32, i32
  }
  func.func @transform_1(%arg0: i32, %arg1: i32) -> (i32, i32, i32, i32, i32) {
    %c0_i32 = arith.constant 0 : i32
    %c1_i32 = arith.constant 1 : i32
    %c0_i32_0 = arith.constant 0 : i32
    %c0_i32_1 = arith.constant 0 : i32
    return %arg0, %c0_i32, %c1_i32, %arg1, %c0_i32_0 : i32, i32, i32, i32, i32
  }
  func.func @transform_2(%arg0: i32, %arg1: i32) -> (i32, i32, i32, i32, i32) {
    %c0_i32 = arith.constant 0 : i32
    %c2_i32 = arith.constant 2 : i32
    %c0_i32_0 = arith.constant 0 : i32
    %c0_i32_1 = arith.constant 0 : i32
    return %arg0, %c0_i32, %c2_i32, %arg1, %c0_i32_0 : i32, i32, i32, i32, i32
  }
  func.func @transform_3(%arg0: i32, %arg1: i32) -> (i32, i32, i32) {
    %c0_i32 = arith.constant 0 : i32
    %c0_i32_0 = arith.constant 0 : i32
    return %arg0, %c0_i32, %arg1 : i32, i32, i32
  }
}

module attributes {stable_mosaic.version = 11 : i64} {
  func.func @_ln_matmul_kernel(%arg0: i32, %arg1: i32, %arg2: memref<16x32xbf16, #tpu.memory_space<vmem>>, %arg3: memref<1x32xf32, #tpu.memory_space<vmem>>, %arg4: memref<1x32xf32, #tpu.memory_space<vmem>>, %arg5: memref<32x128xbf16, #tpu.memory_space<vmem>>, %arg6: memref<1x128xf32, #tpu.memory_space<vmem>>, %arg7: memref<16x128xbf16, #tpu.memory_space<vmem>>, %arg8: memref<16x32xbf16, #tpu.memory_space<vmem>>) attributes {dimension_semantics = [#tpu.dimension_semantics<parallel>, #tpu.dimension_semantics<arbitrary>], iteration_bounds = array<i64: 1, 1>, scalar_prefetch = 0 : i64, scratch_operands = 1 : i64, tpu.core_type = #tpu.core_type<tc>, window_params = [{transform_indices = @transform_0, window_bounds = array<i64: 16, 32>}, {pipeline_mode = #tpu.pipeline_mode<synchronous>, transform_indices = @transform_1, window_bounds = array<i64: 1, 32>}, {pipeline_mode = #tpu.pipeline_mode<synchronous>, transform_indices = @transform_2, window_bounds = array<i64: 1, 32>}, {transform_indices = @transform_3, window_bounds = array<i64: 32, 128>}, {transform_indices = @transform_4, window_bounds = array<i64: 1, 128>}, {transform_indices = @transform_5, window_bounds = array<i64: 16, 128>}]} {
    %c0_i32 = arith.constant 0 : i32
    %0 = arith.cmpi eq, %arg1, %c0_i32 : i32
    %1 = arith.extui %0 : i1 to i32
    %c0_i32_0 = arith.constant 0 : i32
    %2 = arith.cmpi ne, %1, %c0_i32_0 : i32
    scf.if %2 {
      %c0_10 = arith.constant 0 : index
      %c0_11 = arith.constant 0 : index
      %19 = vector.load %arg2[%c0_10, %c0_11] : memref<16x32xbf16, #tpu.memory_space<vmem>>, vector<16x32xbf16>
      %20 = arith.extf %19 : vector<16x32xbf16> to vector<16x32xf32>
      %cst_12 = arith.constant dense<0.000000e+00> : vector<16xf32>
      %21 = vector.multi_reduction <add>, %20, %cst_12 [1] : vector<16x32xf32> to vector<16xf32>
      %22 = vector.shape_cast %21 : vector<16xf32> to vector<16x1xf32>
      %cst_13 = arith.constant 3.200000e+01 : f32
      %23 = vector.broadcast %cst_13 : f32 to vector<16x1xf32>
      %24 = arith.divf %22, %23 : vector<16x1xf32>
      %25 = vector.broadcast %24 : vector<16x1xf32> to vector<16x32xf32>
      %26 = arith.subf %20, %25 : vector<16x32xf32>
      %27 = arith.mulf %26, %26 : vector<16x32xf32>
      %cst_14 = arith.constant dense<0.000000e+00> : vector<16xf32>
      %28 = vector.multi_reduction <add>, %27, %cst_14 [1] : vector<16x32xf32> to vector<16xf32>
      %29 = vector.shape_cast %28 : vector<16xf32> to vector<16x1xf32>
      %cst_15 = arith.constant 3.200000e+01 : f32
      %30 = vector.broadcast %cst_15 : f32 to vector<16x1xf32>
      %31 = arith.divf %29, %30 : vector<16x1xf32>
      %32 = vector.broadcast %24 : vector<16x1xf32> to vector<16x32xf32>
      %33 = arith.subf %20, %32 : vector<16x32xf32>
      %cst_16 = arith.constant 9.99999974E-6 : f32
      %34 = vector.broadcast %cst_16 : f32 to vector<16x1xf32>
      %35 = arith.addf %31, %34 : vector<16x1xf32>
      %36 = math.rsqrt %35 : vector<16x1xf32>
      %37 = vector.broadcast %36 : vector<16x1xf32> to vector<16x32xf32>
      %38 = arith.mulf %33, %37 : vector<16x32xf32>
      %c0_17 = arith.constant 0 : index
      %c0_18 = arith.constant 0 : index
      %39 = vector.load %arg3[%c0_17, %c0_18] : memref<1x32xf32, #tpu.memory_space<vmem>>, vector<1x32xf32>
      %40 = vector.broadcast %39 : vector<1x32xf32> to vector<16x32xf32>
      %41 = arith.mulf %38, %40 : vector<16x32xf32>
      %c0_19 = arith.constant 0 : index
      %c0_20 = arith.constant 0 : index
      %42 = vector.load %arg4[%c0_19, %c0_20] : memref<1x32xf32, #tpu.memory_space<vmem>>, vector<1x32xf32>
      %43 = vector.broadcast %42 : vector<1x32xf32> to vector<16x32xf32>
      %44 = arith.addf %41, %43 : vector<16x32xf32>
      %45 = arith.truncf %44 : vector<16x32xf32> to vector<16x32xbf16>
      %c0_21 = arith.constant 0 : index
      %c0_22 = arith.constant 0 : index
      %46 = vector.load %arg8[%c0_21, %c0_22] : memref<16x32xbf16, #tpu.memory_space<vmem>>, vector<16x32xbf16>
      tpu.vector_store %arg8[%c0_21, %c0_22], %45 {strides = array<i32>} : memref<16x32xbf16, #tpu.memory_space<vmem>>, vector<16x32xbf16>,
    } else {
    }
    %c0 = arith.constant 0 : index
    %c0_1 = arith.constant 0 : index
    %3 = vector.load %arg8[%c0, %c0_1] : memref<16x32xbf16, #tpu.memory_space<vmem>>, vector<16x32xbf16>
    %c0_2 = arith.constant 0 : index
    %c0_3 = arith.constant 0 : index
    %4 = vector.load %arg5[%c0_2, %c0_3] : memref<32x128xbf16, #tpu.memory_space<vmem>>, vector<32x128xbf16>
    %cst = arith.constant dense<0.000000e+00> : vector<16x128xf32>
    %5 = tpu.matmul %3, %4, %cst {dimension_numbers = #tpu.dot_dimension_numbers<[1], [0], [0], [1], [0, 0, 1, 1], [], []>} : vector<16x32xbf16>, vector<32x128xbf16>, vector<16x128xf32> -> vector<16x128xf32>
    %c0_4 = arith.constant 0 : index
    %c0_5 = arith.constant 0 : index
    %6 = vector.load %arg6[%c0_4, %c0_5] : memref<1x128xf32, #tpu.memory_space<vmem>>, vector<1x128xf32>
    %7 = vector.broadcast %6 : vector<1x128xf32> to vector<16x128xf32>
    %8 = arith.addf %5, %7 : vector<16x128xf32>
    %cst_6 = arith.constant 1.702000e+00 : f32
    %9 = vector.broadcast %cst_6 : f32 to vector<16x128xf32>
    %10 = arith.mulf %9, %8 : vector<16x128xf32>
    %11 = arith.negf %10 : vector<16x128xf32>
    %12 = math.exp %11 : vector<16x128xf32>
    %cst_7 = arith.constant 1.000000e+00 : f32
    %13 = vector.broadcast %cst_7 : f32 to vector<16x128xf32>
    %14 = arith.addf %13, %12 : vector<16x128xf32>
    %15 = arith.divf %13, %14 : vector<16x128xf32>
    %16 = arith.mulf %8, %15 : vector<16x128xf32>
    %17 = arith.truncf %16 : vector<16x128xf32> to vector<16x128xbf16>
    %c0_8 = arith.constant 0 : index
    %c0_9 = arith.constant 0 : index
    %18 = vector.load %arg7[%c0_8, %c0_9] : memref<16x128xbf16, #tpu.memory_space<vmem>>, vector<16x128xbf16>
    tpu.vector_store %arg7[%c0_8, %c0_9], %17 {strides = array<i32>} : memref<16x128xbf16, #tpu.memory_space<vmem>>, vector<16x128xbf16>,
    return
  }
  func.func @transform_0(%arg0: i32, %arg1: i32) -> (i32, i32) {
    %c0_i32 = arith.constant 0 : i32
    %c0_i32_0 = arith.constant 0 : i32
    return %arg0, %c0_i32 : i32, i32
  }
  func.func @transform_1(%arg0: i32, %arg1: i32) -> (i32, i32) {
    %c0_i32 = arith.constant 0 : i32
    %c0_i32_0 = arith.constant 0 : i32
    %c0_i32_1 = arith.constant 0 : i32
    return %c0_i32, %c0_i32_0 : i32, i32
  }
  func.func @transform_2(%arg0: i32, %arg1: i32) -> (i32, i32) {
    %c0_i32 = arith.constant 0 : i32
    %c0_i32_0 = arith.constant 0 : i32
    %c0_i32_1 = arith.constant 0 : i32
    return %c0_i32, %c0_i32_0 : i32, i32
  }
  func.func @transform_3(%arg0: i32, %arg1: i32) -> (i32, i32) {
    %c0_i32 = arith.constant 0 : i32
    %c0_i32_0 = arith.constant 0 : i32
    return %c0_i32, %arg1 : i32, i32
  }
  func.func @transform_4(%arg0: i32, %arg1: i32) -> (i32, i32) {
    %c0_i32 = arith.constant 0 : i32
    %c0_i32_0 = arith.constant 0 : i32
    return %c0_i32, %arg1 : i32, i32
  }
  func.func @transform_5(%arg0: i32, %arg1: i32) -> (i32, i32) {
    %c0_i32 = arith.constant 0 : i32
    return %arg0, %arg1 : i32, i32
  }
}

module attributes {stable_mosaic.version = 11 : i64} {
  func.func @_matmul_kernel(%arg0: i32, %arg1: i32, %arg2: i32, %arg3: memref<16x128xbf16, #tpu.memory_space<vmem>>, %arg4: memref<128x32xbf16, #tpu.memory_space<vmem>>, %arg5: memref<1x32xf32, #tpu.memory_space<vmem>>, %arg6: memref<16x32xbf16, #tpu.memory_space<vmem>>, %arg7: memref<16x32xbf16, #tpu.memory_space<vmem>>, %arg8: memref<16x32xf32, #tpu.memory_space<vmem>>) attributes {dimension_semantics = [#tpu.dimension_semantics<parallel>, #tpu.dimension_semantics<parallel>, #tpu.dimension_semantics<arbitrary>], iteration_bounds = array<i64: 1, 1, 1>, scalar_prefetch = 0 : i64, scratch_operands = 1 : i64, tpu.core_type = #tpu.core_type<tc>, window_params = [{transform_indices = @transform_0, window_bounds = array<i64: 16, 128>}, {transform_indices = @transform_1, window_bounds = array<i64: 128, 32>}, {transform_indices = @transform_2, window_bounds = array<i64: 1, 32>}, {transform_indices = @transform_3, window_bounds = array<i64: 16, 32>}, {transform_indices = @transform_4, window_bounds = array<i64: 16, 32>}]} {
    %c0_i32 = arith.constant 0 : i32
    %0 = arith.cmpi eq, %arg2, %c0_i32 : i32
    %1 = arith.extui %0 : i1 to i32
    %c0_i32_0 = arith.constant 0 : i32
    %2 = arith.cmpi ne, %1, %c0_i32_0 : i32
    scf.if %2 {
      %cst_10 = arith.constant 0.000000e+00 : f32
      %12 = vector.broadcast %cst_10 : f32 to vector<16x32xf32>
      %c0_11 = arith.constant 0 : index
      %c0_12 = arith.constant 0 : index
      %13 = vector.load %arg8[%c0_11, %c0_12] : memref<16x32xf32, #tpu.memory_space<vmem>>, vector<16x32xf32>
      tpu.vector_store %arg8[%c0_11, %c0_12], %12 {strides = array<i32>} : memref<16x32xf32, #tpu.memory_space<vmem>>, vector<16x32xf32>,
    } else {
    }
    %c0 = arith.constant 0 : index
    %c0_1 = arith.constant 0 : index
    %3 = vector.load %arg8[%c0, %c0_1] : memref<16x32xf32, #tpu.memory_space<vmem>>, vector<16x32xf32>
    %c0_2 = arith.constant 0 : index
    %c0_3 = arith.constant 0 : index
    %4 = vector.load %arg3[%c0_2, %c0_3] : memref<16x128xbf16, #tpu.memory_space<vmem>>, vector<16x128xbf16>
    %c0_4 = arith.constant 0 : index
    %c0_5 = arith.constant 0 : index
    %5 = vector.load %arg4[%c0_4, %c0_5] : memref<128x32xbf16, #tpu.memory_space<vmem>>, vector<128x32xbf16>
    %cst = arith.constant dense<0.000000e+00> : vector<16x32xf32>
    %6 = tpu.matmul %4, %5, %cst {dimension_numbers = #tpu.dot_dimension_numbers<[1], [0], [0], [1], [0, 0, 1, 1], [], []>} : vector<16x128xbf16>, vector<128x32xbf16>, vector<16x32xf32> -> vector<16x32xf32>
    %7 = arith.addf %3, %6 : vector<16x32xf32>
    %c0_6 = arith.constant 0 : index
    %c0_7 = arith.constant 0 : index
    %8 = vector.load %arg8[%c0_6, %c0_7] : memref<16x32xf32, #tpu.memory_space<vmem>>, vector<16x32xf32>
    tpu.vector_store %arg8[%c0_6, %c0_7], %7 {strides = array<i32>} : memref<16x32xf32, #tpu.memory_space<vmem>>, vector<16x32xf32>,
    %c0_i32_8 = arith.constant 0 : i32
    %9 = arith.cmpi eq, %arg2, %c0_i32_8 : i32
    %10 = arith.extui %9 : i1 to i32
    %c0_i32_9 = arith.constant 0 : i32
    %11 = arith.cmpi ne, %10, %c0_i32_9 : i32
    scf.if %11 {
      %c0_10 = arith.constant 0 : index
      %c0_11 = arith.constant 0 : index
      %12 = vector.load %arg8[%c0_10, %c0_11] : memref<16x32xf32, #tpu.memory_space<vmem>>, vector<16x32xf32>
      %c0_12 = arith.constant 0 : index
      %c0_13 = arith.constant 0 : index
      %13 = vector.load %arg5[%c0_12, %c0_13] : memref<1x32xf32, #tpu.memory_space<vmem>>, vector<1x32xf32>
      %14 = vector.broadcast %13 : vector<1x32xf32> to vector<16x32xf32>
      %15 = arith.addf %12, %14 : vector<16x32xf32>
      %c0_14 = arith.constant 0 : index
      %c0_15 = arith.constant 0 : index
      %16 = vector.load %arg6[%c0_14, %c0_15] : memref<16x32xbf16, #tpu.memory_space<vmem>>, vector<16x32xbf16>
      %17 = arith.extf %16 : vector<16x32xbf16> to vector<16x32xf32>
      %18 = arith.addf %15, %17 : vector<16x32xf32>
      %19 = arith.truncf %18 : vector<16x32xf32> to vector<16x32xbf16>
      %c0_16 = arith.constant 0 : index
      %c0_17 = arith.constant 0 : index
      %20 = vector.load %arg7[%c0_16, %c0_17] : memref<16x32xbf16, #tpu.memory_space<vmem>>, vector<16x32xbf16>
      tpu.vector_store %arg7[%c0_16, %c0_17], %19 {strides = array<i32>} : memref<16x32xbf16, #tpu.memory_space<vmem>>, vector<16x32xbf16>,
    } else {
    }
    return
  }
  func.func @transform_0(%arg0: i32, %arg1: i32, %arg2: i32) -> (i32, i32) {
    %c0_i32 = arith.constant 0 : i32
    return %arg0, %arg2 : i32, i32
  }
  func.func @transform_1(%arg0: i32, %arg1: i32, %arg2: i32) -> (i32, i32) {
    %c0_i32 = arith.constant 0 : i32
    return %arg2, %arg1 : i32, i32
  }
  func.func @transform_2(%arg0: i32, %arg1: i32, %arg2: i32) -> (i32, i32) {
    %c0_i32 = arith.constant 0 : i32
    %c0_i32_0 = arith.constant 0 : i32
    return %c0_i32, %arg1 : i32, i32
  }
  func.func @transform_3(%arg0: i32, %arg1: i32, %arg2: i32) -> (i32, i32) {
    %c0_i32 = arith.constant 0 : i32
    return %arg0, %arg1 : i32, i32
  }
  func.func @transform_4(%arg0: i32, %arg1: i32, %arg2: i32) -> (i32, i32) {
    %c0_i32 = arith.constant 0 : i32
    return %arg0, %arg1 : i32, i32
  }
}

module attributes {stable_mosaic.version = 11 : i64} {
  func.func @_matmul_kernel(%arg0: i32, %arg1: i32, %arg2: i32, %arg3: memref<16x32xbf16, #tpu.memory_space<vmem>>, %arg4: memref<32x32xbf16, #tpu.memory_space<vmem>>, %arg5: memref<1x32xf32, #tpu.memory_space<vmem>>, %arg6: memref<16x32xbf16, #tpu.memory_space<vmem>>, %arg7: memref<16x32xbf16, #tpu.memory_space<vmem>>, %arg8: memref<16x32xf32, #tpu.memory_space<vmem>>) attributes {dimension_semantics = [#tpu.dimension_semantics<parallel>, #tpu.dimension_semantics<parallel>, #tpu.dimension_semantics<arbitrary>], iteration_bounds = array<i64: 1, 1, 1>, scalar_prefetch = 0 : i64, scratch_operands = 1 : i64, tpu.core_type = #tpu.core_type<tc>, window_params = [{transform_indices = @transform_0, window_bounds = array<i64: 16, 32>}, {transform_indices = @transform_1, window_bounds = array<i64: 32, 32>}, {transform_indices = @transform_2, window_bounds = array<i64: 1, 32>}, {transform_indices = @transform_3, window_bounds = array<i64: 16, 32>}, {transform_indices = @transform_4, window_bounds = array<i64: 16, 32>}]} {
    %c0_i32 = arith.constant 0 : i32
    %0 = arith.cmpi eq, %arg2, %c0_i32 : i32
    %1 = arith.extui %0 : i1 to i32
    %c0_i32_0 = arith.constant 0 : i32
    %2 = arith.cmpi ne, %1, %c0_i32_0 : i32
    scf.if %2 {
      %cst_10 = arith.constant 0.000000e+00 : f32
      %12 = vector.broadcast %cst_10 : f32 to vector<16x32xf32>
      %c0_11 = arith.constant 0 : index
      %c0_12 = arith.constant 0 : index
      %13 = vector.load %arg8[%c0_11, %c0_12] : memref<16x32xf32, #tpu.memory_space<vmem>>, vector<16x32xf32>
      tpu.vector_store %arg8[%c0_11, %c0_12], %12 {strides = array<i32>} : memref<16x32xf32, #tpu.memory_space<vmem>>, vector<16x32xf32>,
    } else {
    }
    %c0 = arith.constant 0 : index
    %c0_1 = arith.constant 0 : index
    %3 = vector.load %arg8[%c0, %c0_1] : memref<16x32xf32, #tpu.memory_space<vmem>>, vector<16x32xf32>
    %c0_2 = arith.constant 0 : index
    %c0_3 = arith.constant 0 : index
    %4 = vector.load %arg3[%c0_2, %c0_3] : memref<16x32xbf16, #tpu.memory_space<vmem>>, vector<16x32xbf16>
    %c0_4 = arith.constant 0 : index
    %c0_5 = arith.constant 0 : index
    %5 = vector.load %arg4[%c0_4, %c0_5] : memref<32x32xbf16, #tpu.memory_space<vmem>>, vector<32x32xbf16>
    %cst = arith.constant dense<0.000000e+00> : vector<16x32xf32>
    %6 = tpu.matmul %4, %5, %cst {dimension_numbers = #tpu.dot_dimension_numbers<[1], [0], [0], [1], [0, 0, 1, 1], [], []>} : vector<16x32xbf16>, vector<32x32xbf16>, vector<16x32xf32> -> vector<16x32xf32>
    %7 = arith.addf %3, %6 : vector<16x32xf32>
    %c0_6 = arith.constant 0 : index
    %c0_7 = arith.constant 0 : index
    %8 = vector.load %arg8[%c0_6, %c0_7] : memref<16x32xf32, #tpu.memory_space<vmem>>, vector<16x32xf32>
    tpu.vector_store %arg8[%c0_6, %c0_7], %7 {strides = array<i32>} : memref<16x32xf32, #tpu.memory_space<vmem>>, vector<16x32xf32>,
    %c0_i32_8 = arith.constant 0 : i32
    %9 = arith.cmpi eq, %arg2, %c0_i32_8 : i32
    %10 = arith.extui %9 : i1 to i32
    %c0_i32_9 = arith.constant 0 : i32
    %11 = arith.cmpi ne, %10, %c0_i32_9 : i32
    scf.if %11 {
      %c0_10 = arith.constant 0 : index
      %c0_11 = arith.constant 0 : index
      %12 = vector.load %arg8[%c0_10, %c0_11] : memref<16x32xf32, #tpu.memory_space<vmem>>, vector<16x32xf32>
      %c0_12 = arith.constant 0 : index
      %c0_13 = arith.constant 0 : index
      %13 = vector.load %arg5[%c0_12, %c0_13] : memref<1x32xf32, #tpu.memory_space<vmem>>, vector<1x32xf32>
      %14 = vector.broadcast %13 : vector<1x32xf32> to vector<16x32xf32>
      %15 = arith.addf %12, %14 : vector<16x32xf32>
      %c0_14 = arith.constant 0 : index
      %c0_15 = arith.constant 0 : index
      %16 = vector.load %arg6[%c0_14, %c0_15] : memref<16x32xbf16, #tpu.memory_space<vmem>>, vector<16x32xbf16>
      %17 = arith.extf %16 : vector<16x32xbf16> to vector<16x32xf32>
      %18 = arith.addf %15, %17 : vector<16x32xf32>
      %19 = arith.truncf %18 : vector<16x32xf32> to vector<16x32xbf16>
      %c0_16 = arith.constant 0 : index
      %c0_17 = arith.constant 0 : index
      %20 = vector.load %arg7[%c0_16, %c0_17] : memref<16x32xbf16, #tpu.memory_space<vmem>>, vector<16x32xbf16>
      tpu.vector_store %arg7[%c0_16, %c0_17], %19 {strides = array<i32>} : memref<16x32xbf16, #tpu.memory_space<vmem>>, vector<16x32xbf16>,
    } else {
    }
    return
  }
  func.func @transform_0(%arg0: i32, %arg1: i32, %arg2: i32) -> (i32, i32) {
    %c0_i32 = arith.constant 0 : i32
    return %arg0, %arg2 : i32, i32
  }
  func.func @transform_1(%arg0: i32, %arg1: i32, %arg2: i32) -> (i32, i32) {
    %c0_i32 = arith.constant 0 : i32
    return %arg2, %arg1 : i32, i32
  }
  func.func @transform_2(%arg0: i32, %arg1: i32, %arg2: i32) -> (i32, i32) {
    %c0_i32 = arith.constant 0 : i32
    %c0_i32_0 = arith.constant 0 : i32
    return %c0_i32, %arg1 : i32, i32
  }
  func.func @transform_3(%arg0: i32, %arg1: i32, %arg2: i32) -> (i32, i32) {
    %c0_i32 = arith.constant 0 : i32
    return %arg0, %arg1 : i32, i32
  }
  func.func @transform_4(%arg0: i32, %arg1: i32, %arg2: i32) -> (i32, i32) {
    %c0_i32 = arith.constant 0 : i32
    return %arg0, %arg1 : i32, i32
  }
}

module attributes {stable_mosaic.version = 11 : i64} {
  func.func @_ln_matmul_kernel(%arg0: i32, %arg1: i32, %arg2: memref<2x32xbf16, #tpu.memory_space<vmem>>, %arg3: memref<1x32xf32, #tpu.memory_space<vmem>>, %arg4: memref<1x32xf32, #tpu.memory_space<vmem>>, %arg5: memref<32x16xbf16, #tpu.memory_space<vmem>>, %arg6: memref<2x16xf32, #tpu.memory_space<vmem>>, %arg7: memref<2x32xbf16, #tpu.memory_space<vmem>>) attributes {dimension_semantics = [#tpu.dimension_semantics<parallel>, #tpu.dimension_semantics<arbitrary>], iteration_bounds = array<i64: 1, 1>, scalar_prefetch = 0 : i64, scratch_operands = 1 : i64, tpu.core_type = #tpu.core_type<tc>, window_params = [{transform_indices = @transform_0, window_bounds = array<i64: 2, 32>}, {pipeline_mode = #tpu.pipeline_mode<synchronous>, transform_indices = @transform_1, window_bounds = array<i64: 1, 32>}, {pipeline_mode = #tpu.pipeline_mode<synchronous>, transform_indices = @transform_2, window_bounds = array<i64: 1, 32>}, {transform_indices = @transform_3, window_bounds = array<i64: 32, 16>}, {transform_indices = @transform_4, window_bounds = array<i64: 2, 16>}]} {
    %c0_i32 = arith.constant 0 : i32
    %0 = arith.cmpi eq, %arg1, %c0_i32 : i32
    %1 = arith.extui %0 : i1 to i32
    %c0_i32_0 = arith.constant 0 : i32
    %2 = arith.cmpi ne, %1, %c0_i32_0 : i32
    scf.if %2 {
      %c0_6 = arith.constant 0 : index
      %c0_7 = arith.constant 0 : index
      %7 = vector.load %arg2[%c0_6, %c0_7] : memref<2x32xbf16, #tpu.memory_space<vmem>>, vector<2x32xbf16>
      %8 = arith.extf %7 : vector<2x32xbf16> to vector<2x32xf32>
      %cst_8 = arith.constant dense<0.000000e+00> : vector<2xf32>
      %9 = vector.multi_reduction <add>, %8, %cst_8 [1] : vector<2x32xf32> to vector<2xf32>
      %10 = vector.shape_cast %9 : vector<2xf32> to vector<2x1xf32>
      %cst_9 = arith.constant 3.200000e+01 : f32
      %11 = vector.broadcast %cst_9 : f32 to vector<2x1xf32>
      %12 = arith.divf %10, %11 : vector<2x1xf32>
      %13 = vector.broadcast %12 : vector<2x1xf32> to vector<2x32xf32>
      %14 = arith.subf %8, %13 : vector<2x32xf32>
      %15 = arith.mulf %14, %14 : vector<2x32xf32>
      %cst_10 = arith.constant dense<0.000000e+00> : vector<2xf32>
      %16 = vector.multi_reduction <add>, %15, %cst_10 [1] : vector<2x32xf32> to vector<2xf32>
      %17 = vector.shape_cast %16 : vector<2xf32> to vector<2x1xf32>
      %cst_11 = arith.constant 3.200000e+01 : f32
      %18 = vector.broadcast %cst_11 : f32 to vector<2x1xf32>
      %19 = arith.divf %17, %18 : vector<2x1xf32>
      %20 = vector.broadcast %12 : vector<2x1xf32> to vector<2x32xf32>
      %21 = arith.subf %8, %20 : vector<2x32xf32>
      %cst_12 = arith.constant 9.99999974E-6 : f32
      %22 = vector.broadcast %cst_12 : f32 to vector<2x1xf32>
      %23 = arith.addf %19, %22 : vector<2x1xf32>
      %24 = math.rsqrt %23 : vector<2x1xf32>
      %25 = vector.broadcast %24 : vector<2x1xf32> to vector<2x32xf32>
      %26 = arith.mulf %21, %25 : vector<2x32xf32>
      %c0_13 = arith.constant 0 : index
      %c0_14 = arith.constant 0 : index
      %27 = vector.load %arg3[%c0_13, %c0_14] : memref<1x32xf32, #tpu.memory_space<vmem>>, vector<1x32xf32>
      %28 = vector.broadcast %27 : vector<1x32xf32> to vector<2x32xf32>
      %29 = arith.mulf %26, %28 : vector<2x32xf32>
      %c0_15 = arith.constant 0 : index
      %c0_16 = arith.constant 0 : index
      %30 = vector.load %arg4[%c0_15, %c0_16] : memref<1x32xf32, #tpu.memory_space<vmem>>, vector<1x32xf32>
      %31 = vector.broadcast %30 : vector<1x32xf32> to vector<2x32xf32>
      %32 = arith.addf %29, %31 : vector<2x32xf32>
      %33 = arith.truncf %32 : vector<2x32xf32> to vector<2x32xbf16>
      %c0_17 = arith.constant 0 : index
      %c0_18 = arith.constant 0 : index
      %34 = vector.load %arg7[%c0_17, %c0_18] : memref<2x32xbf16, #tpu.memory_space<vmem>>, vector<2x32xbf16>
      tpu.vector_store %arg7[%c0_17, %c0_18], %33 {strides = array<i32>} : memref<2x32xbf16, #tpu.memory_space<vmem>>, vector<2x32xbf16>,
    } else {
    }
    %c0 = arith.constant 0 : index
    %c0_1 = arith.constant 0 : index
    %3 = vector.load %arg7[%c0, %c0_1] : memref<2x32xbf16, #tpu.memory_space<vmem>>, vector<2x32xbf16>
    %c0_2 = arith.constant 0 : index
    %c0_3 = arith.constant 0 : index
    %4 = vector.load %arg5[%c0_2, %c0_3] : memref<32x16xbf16, #tpu.memory_space<vmem>>, vector<32x16xbf16>
    %cst = arith.constant dense<0.000000e+00> : vector<2x16xf32>
    %5 = tpu.matmul %3, %4, %cst {dimension_numbers = #tpu.dot_dimension_numbers<[1], [0], [0], [1], [0, 0, 1, 1], [], []>} : vector<2x32xbf16>, vector<32x16xbf16>, vector<2x16xf32> -> vector<2x16xf32>
    %c0_4 = arith.constant 0 : index
    %c0_5 = arith.constant 0 : index
    %6 = vector.load %arg6[%c0_4, %c0_5] : memref<2x16xf32, #tpu.memory_space<vmem>>, vector<2x16xf32>
    tpu.vector_store %arg6[%c0_4, %c0_5], %5 {strides = array<i32>} : memref<2x16xf32, #tpu.memory_space<vmem>>, vector<2x16xf32>,
    return
  }
  func.func @transform_0(%arg0: i32, %arg1: i32) -> (i32, i32) {
    %c0_i32 = arith.constant 0 : i32
    %c0_i32_0 = arith.constant 0 : i32
    return %arg0, %c0_i32 : i32, i32
  }
  func.func @transform_1(%arg0: i32, %arg1: i32) -> (i32, i32) {
    %c0_i32 = arith.constant 0 : i32
    %c0_i32_0 = arith.constant 0 : i32
    %c0_i32_1 = arith.constant 0 : i32
    return %c0_i32, %c0_i32_0 : i32, i32
  }
  func.func @transform_2(%arg0: i32, %arg1: i32) -> (i32, i32) {
    %c0_i32 = arith.constant 0 : i32
    %c0_i32_0 = arith.constant 0 : i32
    %c0_i32_1 = arith.constant 0 : i32
    return %c0_i32, %c0_i32_0 : i32, i32
  }
  func.func @transform_3(%arg0: i32, %arg1: i32) -> (i32, i32) {
    %c0_i32 = arith.constant 0 : i32
    %c0_i32_0 = arith.constant 0 : i32
    return %c0_i32, %arg1 : i32, i32
  }
  func.func @transform_4(%arg0: i32, %arg1: i32) -> (i32, i32) {
    %c0_i32 = arith.constant 0 : i32
    return %arg0, %arg1 : i32, i32
  }
}

</mosaic_0001>

<bundles_post_ra>
// kernel: encode_image.13
= control target key start
LH: loop header
LB: loop body
LE: loop exit
PB: predicated region body
PF: predicated region fallthrough
CT: control target
= control target key end

     0   :  { %vm122_vm0 = vcmask 523264   ;;  %vm16_vm1 = vcmask 261120   ;;  %v228_v17 = vmov 0.0   ;;  %vm160_vm2 = vcmask 257024   ;;  %s286_s1 = inlined_call_operand.vmem [shape: bf16[192,32], index: 1, kind: input, shape index: {}]   ;;  %s287_s0 = inlined_call_operand.vmem [shape: bf16[8,192], index: 0, kind: input, shape index: {}]   ;;  %s288_s2 = inlined_call_operand.vmem [shape: bf16[8,32], index: 2, kind: output, shape index: {}]  }
   0x1   :  { %v222_v0 = vld [vmem:[%s286_s1 + $0x38] sm:$0xff]  ;;  %v221_v2 = vld [vmem:[%s286_s1 + $0x30] sm:$0xff]  ;;  %v220_v4 = vld [vmem:[%s286_s1 + $0x28] sm:$0xff]  ;;  %17 = vst.msk [vmem:[#allocation2] sm:$0xff] %vm16_vm1, %v228_v17 }
   0x2   :  { %v226_v1 = vld [vmem:[%s286_s1 + $0x58] sm:$0xff]  ;;  %126 = vmatpush.bf16.msra.mxu0 %v222_v0  ;;  %v225_v3 = vld [vmem:[%s286_s1 + $0x50] sm:$0xff]  ;;  %v224_v5 = vld [vmem:[%s286_s1 + $0x48] sm:$0xff] }
   0x3   :  { %143 = vmatpush.bf16.msra.mxu1 %v226_v1  ;;  %v19_v6 = vld [vmem:[%s287_s0] sm:$0xff]  ;;  %v218_v10 = vld [vmem:[%s286_s1 + $0x18] sm:$0xff]  ;;  %v217_v12 = vld [vmem:[%s286_s1 + $0x10] sm:$0xff] }
   0x4   :  { %v219_v7 = vld [vmem:[%s286_s1 + $0x20] sm:$0xff]  ;;  %v46_v8 = vunpack.c.h.b16 %v19_v6  ;;  %v216_v13 = vld [vmem:[%s286_s1 + $0x8] sm:$0xff]  ;;  %v45_v14 = vunpack.c.l.b16 %v19_v6 }
   0x5   :  { %v223_v9 = vld [vmem:[%s286_s1 + $0x40] sm:$0xff] }
   0x6   :  { %127 = vmatpush.bf16.msra.mxu0 %v221_v2  ;;  %v48_v11 = vpack.c.b16 %v46_v8, %v46_v8  ;;  %v215_v15 = vld [vmem:[%s286_s1] sm:$0xff]  ;;  %v47_v16 = vpack.c.b16 %v45_v14, %v45_v14 }
   0x7   :  { %144 = vmatpush.bf16.msra.mxu1 %v225_v3 }
   0x8   :  { %v18_v20 = vld [vmem:[#allocation2] sm:$0xff] }
   0xa   :  { %128 = vmatpush.bf16.msra.mxu0 %v220_v4 }
   0xb   :  { %145 = vmatpush.bf16.msra.mxu1 %v224_v5 }
   0xe   :  { %129 = vmatpush.bf16.msra.mxu0 %v219_v7 }
   0xf   :  { %146 = vmatpush.bf16.msra.mxu1 %v223_v9 }
  0x12   :  { %130 = vmatpush.bf16.msra.mxu0 %v218_v10  ;;  %214 = vmatmul.msk.bf16.vlgmr.msra.gmra.mxu1 %vm122_vm0, %v48_v11 }
  0x16   :  { %131 = vmatpush.bf16.msra.mxu0 %v217_v12 }
  0x1a   :  { %132 = vmatpush.bf16.msra.mxu0 %v216_v13 }
  0x1e   :  { %133 = vmatpush.bf16.msra.mxu0 %v215_v15 }
  0x21   :  { %134 = vmatmul.bf16.vlgmr.msra.gmra.mxu0 %v47_v16 }
  0x8f   :  { %v148_v18 = vpop.f32.mrf.mxu1 }
  0x97   :  { %v150_v19 = vpop.f32.mrf.mxu1 }
  0x9e   :  { %v135_v21 = vpop.f32.mrf.mxu0 }
  0x9f   :  { %v149_v22 = vadd.f32 %v148_v18, %v135_v21 }
  0xa1   :  { %v152_v23 = vadd.f32 %v149_v22, %v18_v20 }
  0xa3   :  { %154 = vst.msk [vmem:[#allocation2] sm:$0xff] %vm16_vm1, %v152_v23 }
  0xa6   :  { %v137_v24 = vpop.f32.mrf.mxu0 }
  0xaa   :  { %v158_v25 = vld [vmem:[#allocation2] sm:$0xff] }
  0xab   :  { %v159_v26 = vpack.c.bf16 %v158_v25, %v158_v25 }
  0xad   :  { %161 = vst.msk [vmem:[%s288_s2] sm:$0xf] %vm160_vm2, %v159_v26 }

// kernel: encode_image.14
= control target key start
LH: loop header
LB: loop body
LE: loop exit
PB: predicated region body
PF: predicated region fallthrough
CT: control target
= control target key end

     0   :  { %s469_s15 = smov 0   ;;  %s471_s16 = smov 0   ;;  %s520_s0 = inlined_call_operand.vmem [shape: bf16[2,8,32], index: 0, kind: input, shape index: {}]   ;;  %s521_s1 = inlined_call_operand.vmem [shape: f32[8,32], index: 1, kind: input, shape index: {}]   ;;  %s522_s2 = inlined_call_operand.vmem [shape: f32[1,32], index: 2, kind: input, shape index: {}]   ;;  %s523_s3 = inlined_call_operand.vmem [shape: f32[1,32], index: 3, kind: input, shape index: {}]   ;;  %s524_s4 = inlined_call_operand.vmem [shape: bf16[2,8,32], index: 4, kind: output, shape index: {}]  }
   0x1   :  { %s473_s17 = smov 0  }
   0x2 LB: > { %s26_s18 = sadd.s32 1, %s437_s16  ;;  %p383_p0 = scmp.ge.s32.totalorder %s441_s17, 1  ;;  %s441_s17 = sphi %s473_s17, %s14_s17   ;;  %s437_s16 = sphi %s471_s16, %s526_s16   ;;  %s433_s15 = sphi %s469_s15, %s525_s15  }
   0x3   : > { %p28_p1 = scmp.ge.s32.totalorder %s26_s18, 2  ;;  %p189_p2 = scmp.lt.s32.totalorder %s441_s17, 3 }
   0x5   : > { %s528_s18 = smov (%p28_p1, %s26_s18), 0  ;;  %p190_p3 = pnand %p383_p0, %p189_p2 }
   0x6   : > { %p223_p4 = scmp.lt.s32.totalorder (!%p190_p3), %s433_s15, 1 }
   0x7   : > { %193 = sbr.rel (%p190_p3) target bundleno = 291 (0x123), region = 36 }
   0xc   : > { %s530_s15 = smov (!%p223_p4, %s433_s15), 1  ;;  %v243_v1 = vld [vmem:[%s521_s1] sm:$0xff]  ;;  %vm245_vm0 = vcmask 261120   ;;  %v443_v5 = vmov 32.0   ;;  %vm286_vm5 = vcmask 257024  }
   0xd   : > { %s384_s19 = sshll.u32 %s530_s15, 2  ;;  %415 = vrcp.f32 %v443_v5  ;;  %v413_v26 = vld [vmem:[%s522_s2] ss:$0 sm:$0xff] }
   0xe   : > { %s229_s22 = scalar_lea.vmem %s520_s0, %s384_s19  ;;  %v414_v28 = vld [vmem:[%s523_s3] ss:$0 sm:$0xff]  ;;  %s240_s5 = scalar_lea.vmem %s524_s4, %s384_s19 }
   0xf   : > { %v241_v0 = vld [vmem:[%s229_s22] sm:$0xf] }
  0x10   : > { %v242_v2 = vunpack.c.l.bf16 %v241_v0 }
  0x12   : > { %v244_v3 = vadd.f32 %v243_v1, %v242_v2 }
  0x13   : > { %v416_v6 = vpop.eup %415 }
  0x14   : > { %v246_v4 = vsel %vm245_vm0, %v244_v3, 0.0  ;;  %v250_v7 = vmul.f32 32.0, %v416_v6  ;;  %vm254_vm1 = vweird.f32 %v416_v6 }
  0x15   : > { %247 = vadd.xlane.f32.xlu0 %v246_v4 }
  0x16   : > { %v251_v8 = vsub.f32 1.0, %v250_v7 }
  0x18   : > { %v252_v9 = vmul.f32 %v416_v6, %v251_v8 }
  0x1a   : > { %v253_v10 = vadd.f32 %v416_v6, %v252_v9 }
  0x1c   : > { %v255_v11 = vsel %vm254_vm1, %v416_v6, %v253_v10 }
  0x88   : > { %v248_v12 = vpop.xlane.xlu0 %247 }
  0x89   : > { %v256_v13 = vmul.f32 %v255_v11, %v248_v12 }
  0x8b   : > { %v257_v14 = vsub.f32 %v244_v3, %v256_v13 }
  0x8d   : > { %v258_v15 = vmul.f32 %v257_v14, %v257_v14 }
  0x8f   : > { %v259_v16 = vsel %vm245_vm0, %v258_v15, 0.0 }
  0x90   : > { %260 = vadd.xlane.f32.xlu0 %v259_v16 }
 0x103   : > { %v261_v17 = vpop.xlane.xlu0 %260 }
 0x104   : > { %v262_v18 = vmul.f32 %v261_v17, %v255_v11 }
 0x106   : > { %v263_v19 = vadd.f32 1e-05, %v262_v18 }
 0x108   : > { %417 = vrsqrt.f32 %v263_v19  ;;  %vm270_vm3 = vweird.f32 %v263_v19 }
 0x10e   : > { %v418_v20 = vpop.eup %417 }
 0x10f   : > { %v265_v21 = vmul.f32 %v418_v20, %v263_v19  ;;  %vm271_vm2 = vweird.f32 %v418_v20 }
 0x110   : > { %vm272_vm4 = vmor %vm270_vm3, %vm271_vm2 }
 0x111   : > { %v266_v22 = vmul.f32 %v418_v20, %v265_v21 }
 0x113   : > { %v267_v23 = vmul.f32 0.5, %v266_v22 }
 0x115   : > { %v268_v24 = vsub.f32 1.5, %v267_v23 }
 0x117   : > { %v269_v25 = vmul.f32 %v418_v20, %v268_v24 }
 0x119   : > { %v273_v27 = vsel %vm272_vm4, %v418_v20, %v269_v25 }
 0x11a   : > { %v274_v29 = vmul.f32 %v273_v27, %v257_v14 }
 0x11c   : > { %v279_v30 = vmul.f32 %v413_v26, %v274_v29 }
 0x11e   : > { %v284_v31 = vadd.f32 %v414_v28, %v279_v30 }
 0x120   : > { %v285_v32 = vpack.c.bf16 %v284_v31, %v284_v31 }
 0x122   : > { %287 = vst.msk [vmem:[%s240_s5] sm:$0xf] %vm286_vm5, %v285_v32 }
 0x123 PF: > { %s14_s17 = sadd.s32 1, %s441_s17   ;;  %s525_s15 = smov %s437_s16 }
 0x124   : > { %p11_p5 = scmp.ge.s32.totalorder %s14_s17, 4   ;;  %s526_s16 = smov %s528_s18 }
 0x126   :  { %13 = sbr.rel (!%p11_p5) target bundleno = 2 (0x2), region = 69 }

// kernel: encode_image.15
= control target key start
LH: loop header
LB: loop body
LE: loop exit
PB: predicated region body
PF: predicated region fallthrough
CT: control target
= control target key end

     0   :  { %vm29_vm0 = vcmask 261120   ;;  %v182_v5 = vmov 32.0   ;;  %vm95_vm6 = vcmask 257024   ;;  %vm145_vm9 = vcmask 781312   ;;  %s242_s0 = inlined_call_operand.vmem [shape: bf16[16,32], index: 0, kind: input, shape index: {}]   ;;  %s243_s1 = inlined_call_operand.vmem [shape: f32[1,32], index: 1, kind: input, shape index: {}]   ;;  %s244_s2 = inlined_call_operand.vmem [shape: f32[1,32], index: 2, kind: input, shape index: {}]   ;;  %s245_s4 = inlined_call_operand.vmem [shape: f32[1,96], index: 4, kind: input, shape index: {}]   ;;  %s246_s3 = inlined_call_operand.vmem [shape: bf16[32,96], index: 3, kind: input, shape index: {}]   ;;  %s247_s5 = inlined_call_operand.vmem [shape: bf16[16,96], index: 5, kind: output, shape index: {}]  }
   0x1   :  { %v169_v0 = vld [vmem:[%s242_s0] sm:$0xff]   ;;  %176 = vrcp.f32 %v182_v5  ;;  %v167_v25 = vld [vmem:[%s246_s3 + $0x8] sm:$0xff] }
   0x2   :  { %v170_v1 = vunpack.c.l.bf16 %v169_v0  ;;  %v171_v3 = vunpack.c.h.bf16 %v169_v0  ;;  %135 = vmatpush.bf16.msra.mxu0 %v167_v25  ;;  %v166_v28 = vld [vmem:[%s246_s3] sm:$0xff] }
   0x3   :  { %v173_v38 = vld [vmem:[%s243_s1] ss:$0 sm:$0xff] }
   0x4   :  { %v30_v2 = vsel %vm29_vm0, %v170_v1, 0.0  ;;  %v33_v4 = vsel %vm29_vm0, %v171_v3, 0.0  ;;  %v174_v41 = vld [vmem:[%s244_s2] ss:$0 sm:$0xff] }
   0x5   :  { %31 = vadd.xlane.f32.xlu0 %v30_v2  ;;  %v175_v55 = vld [vmem:[%s245_s4] ss:$0 sm:$0xff] }
   0x6   :  { %136 = vmatpush.bf16.msra.mxu0 %v166_v28 }
   0x7   :  { %v177_v6 = vpop.eup %176 }
   0x8   :  { %v37_v7 = vmul.f32 32.0, %v177_v6  ;;  %vm41_vm1 = vweird.f32 %v177_v6 }
   0xa   :  { %v38_v8 = vsub.f32 1.0, %v37_v7 }
   0xc   :  { %v39_v9 = vmul.f32 %v177_v6, %v38_v8 }
   0xd   :  { %34 = vadd.xlane.f32.xlu0 %v33_v4 }
   0xe   :  { %v40_v10 = vadd.f32 %v177_v6, %v39_v9 }
  0x10   :  { %v42_v11 = vsel %vm41_vm1, %v177_v6, %v40_v10 }
  0x78   :  { %v32_v12 = vpop.xlane.xlu0 %31 }
  0x79   :  { %v43_v13 = vmul.f32 %v42_v11, %v32_v12 }
  0x7b   :  { %v45_v14 = vsub.f32 %v170_v1, %v43_v13 }
  0x7d   :  { %v47_v15 = vmul.f32 %v45_v14, %v45_v14 }
  0x7f   :  { %v49_v16 = vsel %vm29_vm0, %v47_v15, 0.0 }
  0x80   :  { %50 = vadd.xlane.f32.xlu1 %v49_v16  ;;  %v35_v17 = vpop.xlane.xlu0 %34 }
  0x81   :  { %v44_v18 = vmul.f32 %v42_v11, %v35_v17 }
  0x83   :  { %v46_v19 = vsub.f32 %v171_v3, %v44_v18 }
  0x85   :  { %v48_v20 = vmul.f32 %v46_v19, %v46_v19 }
  0x87   :  { %v52_v21 = vsel %vm29_vm0, %v48_v20, 0.0 }
  0x88   :  { %53 = vadd.xlane.f32.xlu1 %v52_v21 }
  0xf3   :  { %v51_v22 = vpop.xlane.xlu1 %50 }
  0xf4   :  { %v55_v23 = vmul.f32 %v51_v22, %v42_v11 }
  0xf6   :  { %v57_v24 = vadd.f32 1e-05, %v55_v23 }
  0xf8   :  { %178 = vrsqrt.f32 %v57_v24  ;;  %vm65_vm3 = vweird.f32 %v57_v24 }
  0xfb   :  { %v54_v26 = vpop.xlane.xlu1 %53 }
  0xfc   :  { %v56_v27 = vmul.f32 %v54_v26, %v42_v11 }
  0xfe   :  { %v179_v29 = vpop.eup %178  ;;  %v58_v30 = vadd.f32 1e-05, %v56_v27 }
  0xff   :  { %v60_v31 = vmul.f32 %v179_v29, %v57_v24  ;;  %vm66_vm2 = vweird.f32 %v179_v29 }
 0x100   :  { %180 = vrsqrt.f32 %v58_v30  ;;  %vm67_vm4 = vmor %vm65_vm3, %vm66_vm2  ;;  %vm75_vm7 = vweird.f32 %v58_v30 }
 0x101   :  { %v61_v32 = vmul.f32 %v179_v29, %v60_v31 }
 0x103   :  { %v62_v33 = vmul.f32 0.5, %v61_v32 }
 0x105   :  { %v63_v34 = vsub.f32 1.5, %v62_v33 }
 0x106   :  { %v181_v35 = vpop.eup %180 }
 0x107   :  { %v64_v36 = vmul.f32 %v179_v29, %v63_v34  ;;  %v70_v37 = vmul.f32 %v181_v35, %v58_v30  ;;  %vm76_vm5 = vweird.f32 %v181_v35 }
 0x108   :  { %vm77_vm8 = vmor %vm75_vm7, %vm76_vm5 }
 0x109   :  { %v68_v39 = vsel %vm67_vm4, %v179_v29, %v64_v36  ;;  %v71_v40 = vmul.f32 %v181_v35, %v70_v37 }
 0x10a   :  { %v79_v42 = vmul.f32 %v68_v39, %v45_v14 }
 0x10b   :  { %v72_v43 = vmul.f32 0.5, %v71_v40 }
 0x10c   :  { %v85_v44 = vmul.f32 %v173_v38, %v79_v42 }
 0x10d   :  { %v73_v45 = vsub.f32 1.5, %v72_v43 }
 0x10e   :  { %v91_v46 = vadd.f32 %v174_v41, %v85_v44 }
 0x10f   :  { %v74_v47 = vmul.f32 %v181_v35, %v73_v45 }
 0x110   :  { %v93_v48 = vpack.c.bf16 %v91_v46, %v91_v46 }
 0x111   :  { %v78_v49 = vsel %vm77_vm8, %v181_v35, %v74_v47 }
 0x112   :  { %96 = vst.msk [vmem:[#allocation2] sm:$0xf] %vm95_vm6, %v93_v48  ;;  %v80_v50 = vmul.f32 %v78_v49, %v46_v19 }
 0x114   :  { %v86_v51 = vmul.f32 %v173_v38, %v80_v50 }
 0x116   :  { %v92_v52 = vadd.f32 %v174_v41, %v86_v51 }
 0x118   :  { %v94_v53 = vpack.c.bf16 %v92_v52, %v92_v52 }
 0x11a   :  { %97 = vst.msk [vmem:[#allocation2 + $0x4] sm:$0xf] %vm95_vm6, %v94_v53 }
 0x121   :  { %v165_v54 = vld [vmem:[#allocation2] sm:$0xff] }
 0x122   :  { %164 = vmatmul.msk.bf16.vlgmr.msra.gmra.mxu0 %vm29_vm0, %v165_v54 }
 0x19f   :  { %v138_v56 = vpop.f32.mrf.mxu0 }
 0x1a0   :  { %v139_v57 = vadd.f32 %v175_v55, %v138_v56 }
 0x1a2   :  { %v143_v58 = vpack.c.bf16 %v139_v57, %v139_v57 }
 0x1a4   :  { %146 = vst.msk [vmem:[%s247_s5] sm:$0xf] %vm145_vm9, %v143_v58 }
 0x1a7   :  { %v140_v59 = vpop.f32.mrf.mxu0 }
 0x1a8   :  { %v141_v60 = vadd.f32 %v175_v55, %v140_v59 }
 0x1aa   :  { %v144_v61 = vpack.c.bf16 %v141_v60, %v141_v60 }
 0x1ac   :  { %147 = vst.msk [vmem:[%s247_s5 + $0x4] sm:$0xf] %vm145_vm9, %v144_v61 }

// kernel: encode_image.16
= control target key start
LH: loop header
LB: loop body
LE: loop exit
PB: predicated region body
PF: predicated region fallthrough
CT: control target
= control target key end

     0   :  { %s1236_s12 = smov 0   ;;  %s1238_s13 = smov 0   ;;  %s1449_s0 = inlined_call_operand.vmem [shape: bf16[2,8,3,4,8], index: 0, kind: input, shape index: {}, may-alias: {0,1,2}]   ;;  %s1450_s1 = inlined_call_operand.vmem [shape: bf16[2,8,3,4,8], index: 1, kind: input, shape index: {}, may-alias: {0,1,2}]   ;;  %s1451_s2 = inlined_call_operand.vmem [shape: bf16[2,8,3,4,8], index: 2, kind: input, shape index: {}, may-alias: {0,1,2}]   ;;  %s1452_s3 = inlined_call_operand.vmem [shape: bf16[2,8,32], index: 3, kind: output, shape index: {}]  }
   0x1   :  { %s1240_s14 = smov 0   ;;  %s1242_s15 = smov 0  }
   0x2   :  { %s1244_s16 = smov 0  }
   0x3 LB: > { %s25_s17 = sadd.s32 1, %s1206_s15  ;;  %p41_p1 = scmp.ne.s32.totalorder %s1198_s13, %s1194_s12  ;;  %s1210_s16 = sphi %s1244_s16, %s13_s16   ;;  %s1206_s15 = sphi %s1242_s15, %s1457_s15   ;;  %s1202_s14 = sphi %s1240_s14, %s1456_s14   ;;  %s1198_s13 = sphi %s1238_s13, %s1455_s13   ;;  %s1194_s12 = sphi %s1236_s12, %s1454_s12  }
   0x4   : > { %p27_p0 = scmp.ge.s32.totalorder %s25_s17, 2  ;;  %p42_p2 = scmp.eq.s32.totalorder %s1210_s16, 0 }
   0x5   : > { %s34_s20 = sadd.s32 1, %s1198_s13  ;;  %p1073_p5 = scmp.ge.s32.totalorder %s1210_s16, 2 }
   0x6   : > { %s1459_s17 = smov (%p27_p0, %s25_s17), 0  ;;  %p1267_p3 = por %p42_p2, %p41_p1 }
   0x7   : > { %s29_s19 = ssub.s32 %s1206_s15, %s1459_s17  ;;  %151 = sbr.rel (%p1073_p5) target bundleno = 51 (0x33), region = 16 }
   0x8   : > { %p32_p4 = scmp.eq.s32.totalorder %s29_s19, 0 }
   0xa   : > { %s1275_s21 = scalar_select %p32_p4, %s1198_s13, %s34_s20  }
   0xc   : > { %154 = sbr.rel (!%p1267_p3) target bundleno = 25 (0x19), region = 20  ;;  %s156_s22 = sand.u32 (%p1267_p3), 1, %s1198_s13  }
   0xd   : > { %s1111_s23 = smul.u32 (%p1267_p3), 48, %s1206_s15  ;;  %s1074_s24 = sshll.u32 (%p1267_p3), %s156_s22, 4 }
   0xe   : > { %s158_s28 = scalar_lea.vmem (%p1267_p3), [#allocation2], %s1074_s24 }
   0xf   : > { %s162_s27 = scalar_lea.vmem (%p1267_p3), %s1449_s0, %s1111_s23 }
  0x10   : > { %v179_v0 = vld [vmem:[%s162_s27] sm:$0x3] (%p1267_p3)  ;;  %v181_v1 = vld [vmem:[%s162_s27 + $0x6] sm:$0x3] (%p1267_p3)  ;;  %v183_v2 = vld [vmem:[%s162_s27 + $0xc] sm:$0x3] (%p1267_p3) }
  0x11   : > { %180 = vst [vmem:[%s158_s28] sm:$0x3] %v179_v0  ;;  %v185_v3 = vld [vmem:[%s162_s27 + $0x12] sm:$0x3]  ;;  %v187_v4 = vld [vmem:[%s162_s27 + $0x18] sm:$0x3] }
  0x12   : > { %182 = vst [vmem:[%s158_s28 + $0x2] sm:$0x3] %v181_v1  ;;  %v189_v5 = vld [vmem:[%s162_s27 + $0x1e] sm:$0x3]  ;;  %v191_v6 = vld [vmem:[%s162_s27 + $0x24] sm:$0x3] }
  0x13   : > { %184 = vst [vmem:[%s158_s28 + $0x4] sm:$0x3] %v183_v2  ;;  %v193_v7 = vld [vmem:[%s162_s27 + $0x2a] sm:$0x3] }
  0x14   : > { %186 = vst [vmem:[%s158_s28 + $0x6] sm:$0x3] %v185_v3 }
  0x15   : > { %188 = vst [vmem:[%s158_s28 + $0x8] sm:$0x3] %v187_v4 }
  0x16   : > { %190 = vst [vmem:[%s158_s28 + $0xa] sm:$0x3] %v189_v5 }
  0x17   : > { %192 = vst [vmem:[%s158_s28 + $0xc] sm:$0x3] %v191_v6 }
  0x18   : > { %194 = vst [vmem:[%s158_s28 + $0xe] sm:$0x3] %v193_v7 }
  0x19 PF: > { %234 = sbr.rel (!%p1267_p3) target bundleno = 38 (0x26), region = 61  ;;  %s236_s29 = sand.u32 (%p1267_p3), 1, %s1198_s13  }
  0x1a   : > { %s1077_s30 = smul.u32 (%p1267_p3), 48, %s1206_s15  ;;  %s1076_s4 = sshll.u32 (%p1267_p3), %s236_s29, 4 }
  0x1b   : > { %s238_s8 = scalar_lea.vmem (%p1267_p3), [#allocation3], %s1076_s4 }
  0x1c   : > { %s985_s7 = scalar_lea.vmem (%p1267_p3), %s1450_s1, %s1077_s30 }
  0x1d   : > { %v1078_v8 = vld [vmem:[%s985_s7 + $0x2] sm:$0x3] (%p1267_p3)  ;;  %v1079_v9 = vld [vmem:[%s985_s7 + $0x8] sm:$0x3] (%p1267_p3)  ;;  %v1080_v10 = vld [vmem:[%s985_s7 + $0xe] sm:$0x3] (%p1267_p3) }
  0x1e   : > { %261 = vst [vmem:[%s238_s8] sm:$0x3] %v1078_v8  ;;  %v1081_v11 = vld [vmem:[%s985_s7 + $0x14] sm:$0x3]  ;;  %v1082_v12 = vld [vmem:[%s985_s7 + $0x1a] sm:$0x3] }
  0x1f   : > { %263 = vst [vmem:[%s238_s8 + $0x2] sm:$0x3] %v1079_v9  ;;  %v1083_v13 = vld [vmem:[%s985_s7 + $0x20] sm:$0x3]  ;;  %v1084_v14 = vld [vmem:[%s985_s7 + $0x26] sm:$0x3] }
  0x20   : > { %265 = vst [vmem:[%s238_s8 + $0x4] sm:$0x3] %v1080_v10  ;;  %v1085_v15 = vld [vmem:[%s985_s7 + $0x2c] sm:$0x3] }
  0x21   : > { %267 = vst [vmem:[%s238_s8 + $0x6] sm:$0x3] %v1081_v11 }
  0x22   : > { %269 = vst [vmem:[%s238_s8 + $0x8] sm:$0x3] %v1082_v12 }
  0x23   : > { %271 = vst [vmem:[%s238_s8 + $0xa] sm:$0x3] %v1083_v13 }
  0x24   : > { %273 = vst [vmem:[%s238_s8 + $0xc] sm:$0x3] %v1084_v14 }
  0x25   : > { %275 = vst [vmem:[%s238_s8 + $0xe] sm:$0x3] %v1085_v15 }
  0x26 PF: > { %315 = sbr.rel (!%p1267_p3) target bundleno = 51 (0x33), region = 102  ;;  %s317_s9 = sand.u32 (%p1267_p3), 1, %s1198_s13  }
  0x27   : > { %s1087_s10 = smul.u32 (%p1267_p3), 48, %s1206_s15  ;;  %s1086_s11 = sshll.u32 (%p1267_p3), %s317_s9, 4 }
  0x28   : > { %s319_s23 = scalar_lea.vmem (%p1267_p3), [#allocation4], %s1086_s11 }
  0x29   : > { %s992_s22 = scalar_lea.vmem (%p1267_p3), %s1451_s2, %s1087_s10 }
  0x2a   : > { %v1088_v16 = vld [vmem:[%s992_s22 + $0x4] sm:$0x3] (%p1267_p3)  ;;  %v1089_v17 = vld [vmem:[%s992_s22 + $0xa] sm:$0x3] (%p1267_p3)  ;;  %v1090_v18 = vld [vmem:[%s992_s22 + $0x10] sm:$0x3] (%p1267_p3) }
  0x2b   : > { %342 = vst [vmem:[%s319_s23] sm:$0x3] %v1088_v16  ;;  %v1091_v19 = vld [vmem:[%s992_s22 + $0x16] sm:$0x3]  ;;  %v1092_v20 = vld [vmem:[%s992_s22 + $0x1c] sm:$0x3] }
  0x2c   : > { %344 = vst [vmem:[%s319_s23 + $0x2] sm:$0x3] %v1089_v17  ;;  %v1093_v21 = vld [vmem:[%s992_s22 + $0x22] sm:$0x3]  ;;  %v1094_v22 = vld [vmem:[%s992_s22 + $0x28] sm:$0x3] }
  0x2d   : > { %346 = vst [vmem:[%s319_s23 + $0x4] sm:$0x3] %v1090_v18  ;;  %v1095_v23 = vld [vmem:[%s992_s22 + $0x2e] sm:$0x3] }
  0x2e   : > { %348 = vst [vmem:[%s319_s23 + $0x6] sm:$0x3] %v1091_v19 }
  0x2f   : > { %350 = vst [vmem:[%s319_s23 + $0x8] sm:$0x3] %v1092_v20 }
  0x30   : > { %352 = vst [vmem:[%s319_s23 + $0xa] sm:$0x3] %v1093_v21 }
  0x31   : > { %354 = vst [vmem:[%s319_s23 + $0xc] sm:$0x3] %v1094_v22 }
  0x32   : > { %356 = vst [vmem:[%s319_s23 + $0xe] sm:$0x3] %v1095_v23 }
  0x33 PF: > { %p1096_p6 = scmp.ge.s32.totalorder %s1210_s16, 1  ;;  %p395_p7 = scmp.lt.s32.totalorder %s1210_s16, 3 }
  0x35   : > { %p396_p8 = pnand %p1096_p6, %p395_p7 }
  0x36   : > { %s402_s18 = sand.u32 (!%p396_p8), 1, %s1194_s12   ;;  %p449_p9 = scmp.lt.s32.totalorder (!%p396_p8), %s1202_s14, 1 }
  0x37   : > { %399 = sbr.rel (%p396_p8) target bundleno = 791 (0x317), region = 143  ;;  %s1302_s24 = sshll.u32 (!%p396_p8), %s402_s18, 4 }
  0x38   : > { %s404_s25 = scalar_lea.vmem (!%p396_p8), [#allocation2], %s1302_s24  ;;  %s411_s12 = scalar_lea.vmem (!%p396_p8), [#allocation3], %s1302_s24 }
  0x39   : > { %s418_s26 = scalar_lea.vmem (!%p396_p8), [#allocation4], %s1302_s24  ;;  %s1213_s27 = smov (!%p396_p8), 8  }
  0x3a   : > { %s1214_s5 = smov (!%p396_p8), 16   ;;  %s1215_s6 = smov (!%p396_p8), 24  }
  0x3c   : > { %v1212_v24 = vmov 1934713408   ;;  %vm466_vm0 = vcmask 1047556   ;;  %v457_v26 = vld [vmem:[%s404_s25] sm:$0x3]  ;;  %vm662_vm1 = vcmask 64512  }
  0x3d   : > { %v469_v25 = vunpack.c.l.s4 %v1212_v24  ;;  %v458_v27 = vld [vmem:[%s404_s25 + $0x2] sm:$0x3]  ;;  %v459_v28 = vld [vmem:[%s404_s25 + $0x4] sm:$0x3]  ;;  %v460_v29 = vld [vmem:[%s404_s25 + $0x6] sm:$0x3] }
  0x3e   : > { %v461_v30 = vld [vmem:[%s404_s25 + $0x8] sm:$0x3]  ;;  %v462_v31 = vld [vmem:[%s404_s25 + $0xa] sm:$0x3]  ;;  %v463_v33 = vld [vmem:[%s404_s25 + $0xc] sm:$0x3] }
  0x3f   : > { %v1305_v32 = vunpack.c.0.s8 %v469_v25  ;;  %v464_v34 = vld [vmem:[%s404_s25 + $0xe] sm:$0x3]  ;;  %v465_v35 = vrot.slane %v459_v28, 4  ;;  %v474_v36 = vrot.slane %v460_v29, 4  ;;  %v482_v37 = vrot.slane %v463_v33, 4  ;;  %s1461_s14 = smov (!%p449_p9, %s1202_s14), 1 }
  0x40   : > { %v490_v38 = vrot.slane %v464_v34, 4  ;;  %v524_v41 = vld [vmem:[%s411_s12 + $0x4] sm:$0x3]  ;;  %v525_v42 = vld [vmem:[%s411_s12 + $0x6] sm:$0x3]  ;;  %vm837_vm3 = vcmask 1043456  }
  0x41   : > { %v467_v39 = vsel %vm466_vm0, %v465_v35, %v457_v26  ;;  %v475_v40 = vsel %vm466_vm0, %v474_v36, %v458_v27  ;;  %v483_v45 = vsel %vm466_vm0, %v482_v37, %v461_v30  ;;  %v522_v47 = vld [vmem:[%s411_s12] sm:$0x3]  ;;  %v528_v48 = vld [vmem:[%s411_s12 + $0xc] sm:$0x3]  ;;  %v523_v51 = vld [vmem:[%s411_s12 + $0x2] sm:$0x3] }
  0x42   : > { %v471_v43 = vperm.slane %v467_v39, %v1305_v32  ;;  %v479_v44 = vperm.slane %v475_v40, %v1305_v32  ;;  %v491_v46 = vsel %vm466_vm0, %v490_v38, %v462_v31  ;;  %v487_v49 = vperm.slane %v483_v45, %v1305_v32  ;;  %v526_v52 = vld [vmem:[%s411_s12 + $0x8] sm:$0x3]  ;;  %v529_v56 = vld [vmem:[%s411_s12 + $0xe] sm:$0x3]  ;;  %v527_v60 = vld [vmem:[%s411_s12 + $0xa] sm:$0x3] }
  0x43   : > { %v495_v50 = vperm.slane %v491_v46, %v1305_v32  ;;  %v530_v53 = vrot.slane %v524_v41, 4  ;;  %v538_v54 = vrot.slane %v525_v42, 4  ;;  %v546_v57 = vrot.slane %v528_v48, 4  ;;  %v586_v33 = vld [vmem:[%s418_s26] sm:$0x3]  ;;  %s1100_s28 = sshll.u32 %s1461_s14, 2 }
  0x44   : > { %v500_v55 = vpack.i.b16 %v479_v44, %v471_v43  ;;  %v554_v1 = vrot.slane %v529_v56, 4  ;;  %v501_v8 = vshrl.u32 %v471_v43, 16  ;;  %v502_v9 = vshrl.u32 %v479_v44, 16  ;;  %v587_v34 = vld [vmem:[%s418_s26 + $0x2] sm:$0x3]  ;;  %s455_s4 = scalar_lea.vmem %s1452_s3, %s1100_s28 }
  0x45   : > { %v512_v58 = vpack.i.b16 %v495_v50, %v487_v49  ;;  %v531_v59 = vsel %vm466_vm0, %v530_v53, %v522_v47  ;;  %v539_v61 = vsel %vm466_vm0, %v538_v54, %v523_v51  ;;  %v547_v62 = vsel %vm466_vm0, %v546_v57, %v526_v52  ;;  %v588_v35 = vld [vmem:[%s418_s26 + $0x4] sm:$0x3]  ;;  %v589_v36 = vld [vmem:[%s418_s26 + $0x6] sm:$0x3]  ;;  %v590_v37 = vld [vmem:[%s418_s26 + $0x8] sm:$0x3] }
  0x46   : > { %651 = vst [vmem:[#allocation1] ss:$4 sm:$0xff] %v500_v55  ;;  %v1320_v63 = vperm.slane %v531_v59, %v1305_v32  ;;  %v1323_v0 = vperm.slane %v539_v61, %v1305_v32  ;;  %v1326_v2 = vperm.slane %v547_v62, %v1305_v32  ;;  %v555_v3 = vsel %vm466_vm0, %v554_v1, %v527_v60  ;;  %v591_v38 = vld [vmem:[%s418_s26 + $0xa] sm:$0x3]  ;;  %v592_v40 = vld [vmem:[%s418_s26 + $0xc] sm:$0x3] }
  0x47   : > { %654 = vst [vmem:[#allocation1 + $0x1] ss:$4 sm:$0xff] %v512_v58  ;;  %v1330_v4 = vperm.slane %v555_v3, %v1305_v32  ;;  %v513_v10 = vshrl.u32 %v487_v49, 16  ;;  %v514_v11 = vshrl.u32 %v495_v50, 16  ;;  %v503_v12 = vpack.i.b16 %v502_v9, %v501_v8  ;;  %v593_v41 = vld [vmem:[%s418_s26 + $0xe] sm:$0x3] }
  0x48   : > { %v564_v5 = vpack.i.b16 %v1323_v0, %v1320_v63  ;;  %v565_v16 = vshrl.u32 %v1320_v63, 16  ;;  %v566_v17 = vshrl.u32 %v1323_v0, 16  ;;  %v577_v18 = vshrl.u32 %v1326_v2, 16 }
  0x49   : > { %v576_v6 = vpack.i.b16 %v1330_v4, %v1326_v2  ;;  %v515_v13 = vpack.i.b16 %v514_v11, %v513_v10  ;;  %v578_v19 = vshrl.u32 %v1330_v4, 16  ;;  %v472_v22 = vrot.slane %v471_v43, 4 }
  0x4a   : > { %v567_v20 = vpack.i.b16 %v566_v17, %v565_v16  ;;  %v480_v23 = vrot.slane %v479_v44, 4  ;;  %v488_v24 = vrot.slane %v487_v49, 4  ;;  %v496_v25 = vrot.slane %v495_v50, 4 }
  0x4b   : > { %v579_v21 = vpack.i.b16 %v578_v19, %v577_v18  ;;  %v473_v27 = vsel %vm466_vm0, 0, %v472_v22  ;;  %v536_v31 = vrot.slane %v1320_v63, 4  ;;  %v594_v42 = vrot.slane %v588_v35, 4 }
  0x4c   : > { %v481_v28 = vsel %vm466_vm0, 0, %v480_v23  ;;  %v489_v29 = vsel %vm466_vm0, 0, %v488_v24  ;;  %v497_v30 = vsel %vm466_vm0, 0, %v496_v25  ;;  %v602_v43 = vrot.slane %v589_v36, 4 }
  0x4d   : > { %v506_v39 = vpack.i.b16 %v481_v28, %v473_v27  ;;  %v518_v44 = vpack.i.b16 %v497_v30, %v489_v29  ;;  %v544_v45 = vrot.slane %v1323_v0, 4  ;;  %v610_v46 = vrot.slane %v592_v40, 4 }
  0x4e   : > { %v655_v7 = vld.sshfl [vmem:[#allocation1] sm:$0xff pattern:$0x73625140]  ;;  %v618_v47 = vrot.slane %v593_v41, 4  ;;  %v552_v48 = vrot.slane %v1326_v2, 4  ;;  %v560_v49 = vrot.slane %v1330_v4, 4  ;;  %v595_v50 = vsel %vm466_vm0, %v594_v42, %v586_v33 }
  0x4f   : > { %657 = vst [vmem:[#allocation1] ss:$4 sm:$0xff] %v564_v5  ;;  %v603_v51 = vsel %vm466_vm0, %v602_v43, %v587_v34  ;;  %v1354_v53 = vperm.slane %v595_v50, %v1305_v32  ;;  %v611_v55 = vsel %vm466_vm0, %v610_v46, %v590_v37  ;;  %v537_v60 = vsel %vm466_vm0, 0, %v536_v31 }
  0x50   : > { %660 = vst [vmem:[#allocation1 + $0x1] ss:$4 sm:$0xff] %v576_v6  ;;  %v1357_v54 = vperm.slane %v603_v51, %v1305_v32  ;;  %v619_v56 = vsel %vm466_vm0, %v618_v47, %v591_v38  ;;  %v1363_v58 = vperm.slane %v611_v55, %v1305_v32  ;;  %v545_v61 = vsel %vm466_vm0, 0, %v544_v45 }
  0x51   : > { %v1366_v59 = vperm.slane %v619_v56, %v1305_v32  ;;  %v553_v62 = vsel %vm466_vm0, 0, %v552_v48  ;;  %v561_v63 = vsel %vm466_vm0, 0, %v560_v49  ;;  %v570_v0 = vpack.i.b16 %v545_v61, %v537_v60 }
  0x52   : > { %v582_v1 = vpack.i.b16 %v561_v63, %v553_v62  ;;  %v507_v3 = vshrl.u32 %v473_v27, 16  ;;  %v508_v32 = vshrl.u32 %v481_v28, 16  ;;  %v519_v4 = vshrl.u32 %v489_v29, 16 }
  0x53   : > { %v520_v5 = vshrl.u32 %v497_v30, 16  ;;  %v571_v10 = vshrl.u32 %v537_v60, 16  ;;  %v572_v11 = vshrl.u32 %v545_v61, 16  ;;  %v628_v17 = vpack.i.b16 %v1357_v54, %v1354_v53 }
  0x54   : > { %v509_v6 = vpack.i.b16 %v508_v32, %v507_v3  ;;  %v640_v18 = vpack.i.b16 %v1366_v59, %v1363_v58  ;;  %v771_v23 = vlaneseq  ;;  %v629_v32 = vshrl.u32 %v1354_v53, 16 }
  0x55   : > { %vm926_vm4 = vcmask 60416   ;;  %vm933_vm5 = vcmask 126016   ;;  %vm940_vm6 = vcmask 191616   ;;  %vm947_vm7 = vcmask 257216  }
  0x56   : > { %v772_v24 = vand.u32 127, %v771_v23 }
  0x57   : > { %v661_v14 = vld.sshfl [vmem:[#allocation1] sm:$0xff pattern:$0x73625140] }
  0x58   : > { %681 = vst [vmem:[#allocation1] ss:$4 sm:$0xff] %v503_v12  ;;  %v665_v15 = vsel %vm662_vm1, %v661_v14, 0  ;;  %v583_v12 = vshrl.u32 %v553_v62, 16  ;;  %v573_v14 = vpack.i.b16 %v572_v11, %v571_v10  ;;  %vm773_vm2 = vcmp.lt.s32.totalorder %v772_v24, 5 }
  0x59   : > { %684 = vst [vmem:[#allocation1 + $0x1] ss:$4 sm:$0xff] %v515_v13  ;;  %674 = vmatpush.bf16.xpose.msra.mxu0 %v665_v15  ;;  %v584_v13 = vshrl.u32 %v561_v63, 16 }
  0x5b   : > { %v585_v15 = vpack.i.b16 %v584_v13, %v583_v12  ;;  %v600_v13 = vrot.slane %v1354_v53, 4 }
  0x60   : > { %v685_v26 = vld.sshfl [vmem:[#allocation1] sm:$0xff pattern:$0x73625140]  ;;  %1101 = vmatmul.msk.bf16.vlgmr.msra.gmra.mxu0 %vm662_vm1, %v655_v7  ;;  %v521_v7 = vpack.i.b16 %v520_v5, %v519_v4  ;;  %v630_v4 = vshrl.u32 %v1357_v54, 16  ;;  %v641_v5 = vshrl.u32 %v1363_v58, 16 }
  0x61   : > { %687 = vst [vmem:[#allocation1] ss:$4 sm:$0xff] %v567_v20 }
  0x62   : > { %690 = vst [vmem:[#allocation1 + $0x1] ss:$4 sm:$0xff] %v579_v21 }
  0x69   : > { %v691_v52 = vld.sshfl [vmem:[#allocation1] sm:$0xff pattern:$0x73625140] }
  0x6a   : > { %v694_v57 = vsel %vm662_vm1, %v691_v52, 0  ;;  %710 = vst [vmem:[#allocation1] ss:$4 sm:$0xff] %v506_v39 }
  0x6b   : > { %703 = vmatpush.bf16.xpose.msra.mxu1 %v694_v57  ;;  %713 = vst [vmem:[#allocation1 + $0x1] ss:$4 sm:$0xff] %v518_v44 }
  0x72   : > { %1102 = vmatmul.msk.bf16.vlgmr.msra.gmra.mxu1 %vm662_vm1, %v685_v26  ;;  %v714_v2 = vld.sshfl [vmem:[#allocation1] sm:$0xff pattern:$0x73625140] }
  0x73   : > { %716 = vst [vmem:[#allocation1] ss:$4 sm:$0xff] %v570_v0 }
  0x74   : > { %719 = vst [vmem:[#allocation1 + $0x1] ss:$4 sm:$0xff] %v582_v1 }
  0x7b   : > { %v720_v8 = vld.sshfl [vmem:[#allocation1] sm:$0xff pattern:$0x73625140] }
  0x7c   : > { %v723_v9 = vsel %vm662_vm1, %v720_v8, 0  ;;  %739 = vst [vmem:[#allocation1] ss:$4 sm:$0xff] %v509_v6  ;;  %v642_v6 = vshrl.u32 %v1366_v59, 16 }
  0x7d   : > { %732 = vmatpush.bf16.xpose.msra.mxu2 %v723_v9  ;;  %742 = vst [vmem:[#allocation1 + $0x1] ss:$4 sm:$0xff] %v521_v7  ;;  %v631_v7 = vpack.i.b16 %v630_v4, %v629_v32 }
  0x7e   : > { %v643_v8 = vpack.i.b16 %v642_v6, %v641_v5 }
  0x84   : > { %1103 = vmatmul.msk.bf16.vlgmr.msra.gmra.mxu2 %vm662_vm1, %v714_v2  ;;  %v743_v16 = vld.sshfl [vmem:[#allocation1] sm:$0xff pattern:$0x73625140] }
  0x85   : > { %745 = vst [vmem:[#allocation1] ss:$4 sm:$0xff] %v573_v14  ;;  %v608_v14 = vrot.slane %v1357_v54, 4 }
  0x86   : > { %748 = vst [vmem:[#allocation1 + $0x1] ss:$4 sm:$0xff] %v585_v15  ;;  %v616_v15 = vrot.slane %v1363_v58, 4 }
  0x8d   : > { %v749_v19 = vld.sshfl [vmem:[#allocation1] sm:$0xff pattern:$0x73625140] }
  0x8e   : > { %v752_v20 = vsel %vm662_vm1, %v749_v19, 0  ;;  %829 = vst [vmem:[#allocation1] ss:$4 sm:$0xff] %v628_v17  ;;  %v601_v17 = vsel %vm466_vm0, 0, %v600_v13  ;;  %v617_v19 = vsel %vm466_vm0, 0, %v616_v15 }
  0x8f   : > { %761 = vmatpush.bf16.xpose.msra.mxu3 %v752_v20  ;;  %832 = vst [vmem:[#allocation1 + $0x1] ss:$4 sm:$0xff] %v640_v18  ;;  %v609_v18 = vsel %vm466_vm0, 0, %v608_v14  ;;  %v635_v23 = vshrl.u32 %v601_v17, 16  ;;  %v647_v54 = vshrl.u32 %v617_v19, 16 }
  0x90   : > { %v636_v53 = vshrl.u32 %v609_v18, 16 }
  0x92   : > { %v637_v58 = vpack.i.b16 %v636_v53, %v635_v23 }
  0x96   : > { %1104 = vmatmul.msk.bf16.vlgmr.msra.gmra.mxu3 %vm662_vm1, %v743_v16  ;;  %v833_v9 = vld.sshfl [vmem:[#allocation1] sm:$0xff pattern:$0x73625140]  ;;  %v624_v16 = vrot.slane %v1366_v59, 4 }
  0x97   : > { %854 = vst [vmem:[#allocation1] ss:$4 sm:$0xff] %v631_v7  ;;  %v838_v12 = vsel %vm837_vm3, %v833_v9, 0 }
  0x98   : > { %857 = vst [vmem:[#allocation1 + $0x1] ss:$4 sm:$0xff] %v643_v8  ;;  %847 = vmatpush.bf16.msrb.mxu0 %v838_v12  ;;  %v625_v20 = vsel %vm466_vm0, 0, %v624_v16 }
  0x99   : > { %v648_v24 = vshrl.u32 %v625_v20, 16 }
  0x9f   : > { %v858_v10 = vld.sshfl [vmem:[#allocation1] sm:$0xff pattern:$0x73625140] }
  0xa0   : > { %v862_v11 = vsel %vm837_vm3, %v858_v10, 0 }
  0xa1   : > { %871 = vmatpush.bf16.msrb.mxu1 %v862_v11 }
  0xdd   : > { %v676_v21 = vpop.f32.mrf.mxu0 }
  0xde   : > { %v767_v28 = vmul.f32 0.35355338, %v676_v21  ;;  %v634_v21 = vpack.i.b16 %v609_v18, %v601_v17 }
  0xe0   : > { %v776_v30 = vsel %vm773_vm2, %v767_v28, -1e+30  ;;  %878 = vst [vmem:[#allocation1] ss:$4 sm:$0xff] %v634_v21 }
  0xe1   : > { %v780_v33 = vsel %vm662_vm1, %v776_v30, -inf }
  0xe5   : > { %v678_v22 = vpop.f32.mrf.mxu0 }
  0xe6   : > { %v646_v22 = vpack.i.b16 %v625_v20, %v617_v19 }
  0xe8   : > { %881 = vst [vmem:[#allocation1 + $0x1] ss:$4 sm:$0xff] %v646_v22 }
  0xef   : > { %v705_v25 = vpop.f32.mrf.mxu1 }
  0xf0   : > { %v768_v26 = vmul.f32 0.35355338, %v705_v25  ;;  %v649_v25 = vpack.i.b16 %v648_v24, %v647_v54 }
  0xf2   : > { %v777_v27 = vsel %vm773_vm2, %v768_v26, -1e+30  ;;  %v882_v26 = vld.sshfl [vmem:[#allocation1] sm:$0xff pattern:$0x73625140] }
  0xf3   : > { %v783_v29 = vsel %vm662_vm1, %v777_v27, -inf  ;;  %902 = vst [vmem:[#allocation1] ss:$4 sm:$0xff] %v637_v58 }
  0xf4   : > { %784 = vmax.xlane.f32.xlu1 %v783_v29  ;;  %905 = vst [vmem:[#allocation1 + $0x1] ss:$4 sm:$0xff] %v649_v25 }
  0xf7   : > { %v707_v31 = vpop.f32.mrf.mxu1 }
  0xfc   : > { %781 = vmax.xlane.f32.xlu1 %v780_v33  ;;  %v906_v33 = vld.sshfl [vmem:[#allocation1] sm:$0xff pattern:$0x73625140] }
 0x107   : > { %v734_v34 = vpop.f32.mrf.mxu2 }
 0x108   : > { %v769_v35 = vmul.f32 0.35355338, %v734_v34  ;;  %v910_v34 = vsel %vm837_vm3, %v906_v33, 0 }
 0x109   : > { %919 = vmatpush.bf16.msrb.mxu3 %v910_v34 }
 0x10a   : > { %v778_v36 = vsel %vm773_vm2, %v769_v35, -1e+30 }
 0x10b   : > { %v786_v37 = vsel %vm662_vm1, %v778_v36, -inf }
 0x10c   : > { %787 = vmax.xlane.f32.xlu0 %v786_v37 }
 0x10f   : > { %v736_v38 = vpop.f32.mrf.mxu2 }
 0x119   : > { %v763_v39 = vpop.f32.mrf.mxu3 }
 0x11a   : > { %v770_v40 = vmul.f32 0.35355338, %v763_v39 }
 0x11c   : > { %v779_v41 = vsel %vm773_vm2, %v770_v40, -1e+30 }
 0x11d   : > { %v789_v42 = vsel %vm662_vm1, %v779_v41, -inf }
 0x11e   : > { %790 = vmax.xlane.f32.xlu0 %v789_v42 }
 0x121   : > { %v765_v43 = vpop.f32.mrf.mxu3 }
 0x167   : > { %v785_v44 = vpop.xlane.xlu1 %784 }
 0x168   : > { %v793_v45 = vsub.f32 %v777_v27, %v785_v44  ;;  %v886_v27 = vsel %vm837_vm3, %v882_v26, 0 }
 0x169   : > { %895 = vmatpush.bf16.msrb.mxu2 %v886_v27 }
 0x16a   : > { %v798_v46 = vmul.f32 1.442695, %v793_v45 }
 0x16c   : > { %1156 = vpow2.f32 %v798_v46 }
 0x16f   : > { %v782_v47 = vpop.xlane.xlu1 %781 }
 0x170   : > { %v792_v48 = vsub.f32 %v776_v30, %v782_v47 }
 0x172   : > { %v1389_v49 = vpop.eup %1156  ;;  %v796_v50 = vmul.f32 1.442695, %v792_v48 }
 0x173   : > { %v807_v51 = vsel %vm662_vm1, %v1389_v49, 0.0 }
 0x174   : > { %1158 = vpow2.f32 %v796_v50  ;;  %808 = vadd.xlane.f32.xlu0 %v807_v51 }
 0x17a   : > { %v1393_v52 = vpop.eup %1158 }
 0x17b   : > { %v804_v55 = vsel %vm662_vm1, %v1393_v52, 0.0 }
 0x17c   : > { %805 = vadd.xlane.f32.xlu1 %v804_v55 }
 0x17f   : > { %v788_v56 = vpop.xlane.xlu0 %787 }
 0x180   : > { %v794_v57 = vsub.f32 %v778_v36, %v788_v56 }
 0x182   : > { %v800_v60 = vmul.f32 1.442695, %v794_v57 }
 0x184   : > { %1160 = vpow2.f32 %v800_v60 }
 0x18a   : > { %v1397_v61 = vpop.eup %1160 }
 0x18b   : > { %v810_v62 = vsel %vm662_vm1, %v1397_v61, 0.0 }
 0x18c   : > { %811 = vadd.xlane.f32.xlu2 %v810_v62 }
 0x191   : > { %v791_v63 = vpop.xlane.xlu0 %790 }
 0x192   : > { %v795_v0 = vsub.f32 %v779_v41, %v791_v63 }
 0x194   : > { %v802_v1 = vmul.f32 1.442695, %v795_v0 }
 0x196   : > { %1162 = vpow2.f32 %v802_v1 }
 0x19c   : > { %v1401_v2 = vpop.eup %1162 }
 0x19d   : > { %v813_v3 = vsel %vm662_vm1, %v1401_v2, 0.0 }
 0x19e   : > { %814 = vadd.xlane.f32.xlu2 %v813_v3 }
 0x1e7   : > { %v809_v59 = vpop.xlane.xlu0 %808 }
 0x1e8   : > { %1164 = vrcp.f32 %v809_v59 }
 0x1ee   : > { %v1165_v28 = vpop.eup %1164 }
 0x1ef   : > { %v821_v29 = vmul.f32 %v1165_v28, %v1389_v49  ;;  %v806_v30 = vpop.xlane.xlu1 %805 }
 0x1f0   : > { %1166 = vrcp.f32 %v806_v30 }
 0x1f1   : > { %v825_v31 = vpack.c.bf16 %v821_v29, %v821_v29 }
 0x1f3   : > { %1106 = vmatmul.msk.bf16.vlgmr.msrb.gmra.mxu1 %vm662_vm1, %v825_v31 }
 0x1f6   : > { %v1167_v35 = vpop.eup %1166 }
 0x1f7   : > { %v820_v36 = vmul.f32 %v1167_v35, %v1393_v52 }
 0x1f9   : > { %v824_v37 = vpack.c.bf16 %v820_v36, %v820_v36 }
 0x1fb   : > { %1105 = vmatmul.msk.bf16.vlgmr.msrb.gmra.mxu0 %vm662_vm1, %v824_v37 }
 0x1ff   : > { %v812_v38 = vpop.xlane.xlu2 %811 }
 0x200   : > { %1168 = vrcp.f32 %v812_v38 }
 0x206   : > { %v1169_v39 = vpop.eup %1168 }
 0x207   : > { %v822_v40 = vmul.f32 %v1169_v39, %v1397_v61 }
 0x209   : > { %v826_v41 = vpack.c.bf16 %v822_v40, %v822_v40 }
 0x20b   : > { %1107 = vmatmul.msk.bf16.vlgmr.msrb.gmra.mxu2 %vm662_vm1, %v826_v41 }
 0x211   : > { %v815_v42 = vpop.xlane.xlu2 %814 }
 0x212   : > { %1170 = vrcp.f32 %v815_v42 }
 0x218   : > { %v1171_v43 = vpop.eup %1170 }
 0x219   : > { %v823_v44 = vmul.f32 %v1171_v43, %v1401_v2 }
 0x21b   : > { %v827_v45 = vpack.c.bf16 %v823_v44, %v823_v44 }
 0x21d   : > { %1108 = vmatmul.msk.bf16.vlgmr.msrb.gmra.mxu3 %vm662_vm1, %v827_v45 }
 0x270   : > { %v873_v46 = vpop.f32.mrf.mxu1 }
 0x271   : > { %v928_v47 = vpack.c.bf16 %v873_v46, %v873_v46 }
 0x273   : > { %930 = vrot.lane.b32.xlu2 %v928_v47, %s1213_s27 }
 0x278   : > { %v849_v48 = vpop.f32.mrf.mxu0  ;;  %v875_v49 = vpop.f32.mrf.mxu1 }
 0x279   : > { %v925_v50 = vpack.c.bf16 %v849_v48, %v849_v48 }
 0x27b   : > { %927 = vst.msk [vmem:[%s455_s4] sm:$0xf] %vm926_vm4, %v925_v50 }
 0x280   : > { %v851_v51 = vpop.f32.mrf.mxu0 }
 0x28e   : > { %v897_v52 = vpop.f32.mrf.mxu2 }
 0x28f   : > { %v935_v55 = vpack.c.bf16 %v897_v52, %v897_v52 }
 0x291   : > { %937 = vrot.lane.b32.xlu0 %v935_v55, %s1214_s5 }
 0x296   : > { %v899_v56 = vpop.f32.mrf.mxu2 }
 0x2a0   : > { %v921_v57 = vpop.f32.mrf.mxu3 }
 0x2a1   : > { %v942_v60 = vpack.c.bf16 %v921_v57, %v921_v57 }
 0x2a3   : > { %944 = vrot.lane.b32.xlu1 %v942_v60, %s1215_s6 }
 0x2a8   : > { %v923_v61 = vpop.f32.mrf.mxu3 }
 0x2cd   : > { %v931_v62 = vpop.permute.xlu2 %930 }
 0x2ce   : > { %934 = vst.msk [vmem:[%s455_s4] sm:$0xf] %vm933_vm5, %v931_v62 }
 0x303   : > { %v938_v63 = vpop.permute.xlu0 %937 }
 0x304   : > { %941 = vst.msk [vmem:[%s455_s4] sm:$0xf] %vm940_vm6, %v938_v63 }
 0x315   : > { %v945_v0 = vpop.permute.xlu1 %944 }
 0x316   : > { %948 = vst.msk [vmem:[%s455_s4] sm:$0xf] %vm947_vm7, %v945_v0 }
 0x317 PF: > { %s13_s16 = sadd.s32 1, %s1210_s16   ;;  %s1454_s12 = smov %s1198_s13 }
 0x318   : > { %p10_p10 = scmp.ge.s32.totalorder %s13_s16, 4   ;;  %s1455_s13 = smov %s1275_s21 }
 0x319   : > { %s1456_s14 = smov %s1206_s15  ;;  %s1457_s15 = smov %s1459_s17 }
 0x31a   :  { %12 = sbr.rel (!%p10_p10) target bundleno = 3 (0x3), region = 218 }

// kernel: encode_image.18
= control target key start
LH: loop header
LB: loop body
LE: loop exit
PB: predicated region body
PF: predicated region fallthrough
CT: control target
= control target key end

     0   :  { %vm29_vm0 = vcmask 261120   ;;  %v238_v5 = vmov 32.0   ;;  %vm95_vm6 = vcmask 257024   ;;  %s295_s0 = inlined_call_operand.vmem [shape: bf16[16,32], index: 0, kind: input, shape index: {}]   ;;  %s296_s1 = inlined_call_operand.vmem [shape: f32[1,32], index: 1, kind: input, shape index: {}]   ;;  %s297_s2 = inlined_call_operand.vmem [shape: f32[1,32], index: 2, kind: input, shape index: {}]   ;;  %s298_s4 = inlined_call_operand.vmem [shape: f32[1,128], index: 4, kind: input, shape index: {}]   ;;  %s299_s3 = inlined_call_operand.vmem [shape: bf16[32,128], index: 3, kind: input, shape index: {}]   ;;  %s300_s5 = inlined_call_operand.vmem [shape: bf16[16,128], index: 5, kind: output, shape index: {}]  }
   0x1   :  { %v212_v0 = vld [vmem:[%s295_s0] sm:$0xff]   ;;  %224 = vrcp.f32 %v238_v5  ;;  %v210_v25 = vld [vmem:[%s299_s3 + $0x8] sm:$0xff] }
   0x2   :  { %v213_v1 = vunpack.c.l.bf16 %v212_v0  ;;  %v214_v3 = vunpack.c.h.bf16 %v212_v0  ;;  %135 = vmatpush.bf16.msra.mxu0 %v210_v25  ;;  %v209_v28 = vld [vmem:[%s299_s3] sm:$0xff] }
   0x3   :  { %v221_v38 = vld [vmem:[%s296_s1] ss:$0 sm:$0xff] }
   0x4   :  { %v30_v2 = vsel %vm29_vm0, %v213_v1, 0.0  ;;  %v33_v4 = vsel %vm29_vm0, %v214_v3, 0.0  ;;  %v222_v41 = vld [vmem:[%s297_s2] ss:$0 sm:$0xff] }
   0x5   :  { %31 = vadd.xlane.f32.xlu0 %v30_v2  ;;  %v223_v55 = vld [vmem:[%s298_s4] ss:$0 sm:$0xff] }
   0x6   :  { %136 = vmatpush.bf16.msra.mxu0 %v209_v28 }
   0x7   :  { %v225_v6 = vpop.eup %224 }
   0x8   :  { %v37_v7 = vmul.f32 32.0, %v225_v6  ;;  %vm41_vm1 = vweird.f32 %v225_v6 }
   0xa   :  { %v38_v8 = vsub.f32 1.0, %v37_v7 }
   0xc   :  { %v39_v9 = vmul.f32 %v225_v6, %v38_v8 }
   0xd   :  { %34 = vadd.xlane.f32.xlu0 %v33_v4 }
   0xe   :  { %v40_v10 = vadd.f32 %v225_v6, %v39_v9 }
  0x10   :  { %v42_v11 = vsel %vm41_vm1, %v225_v6, %v40_v10 }
  0x78   :  { %v32_v12 = vpop.xlane.xlu0 %31 }
  0x79   :  { %v43_v13 = vmul.f32 %v42_v11, %v32_v12 }
  0x7b   :  { %v45_v14 = vsub.f32 %v213_v1, %v43_v13 }
  0x7d   :  { %v47_v15 = vmul.f32 %v45_v14, %v45_v14 }
  0x7f   :  { %v49_v16 = vsel %vm29_vm0, %v47_v15, 0.0 }
  0x80   :  { %50 = vadd.xlane.f32.xlu1 %v49_v16  ;;  %v35_v17 = vpop.xlane.xlu0 %34 }
  0x81   :  { %v44_v18 = vmul.f32 %v42_v11, %v35_v17 }
  0x83   :  { %v46_v19 = vsub.f32 %v214_v3, %v44_v18 }
  0x85   :  { %v48_v20 = vmul.f32 %v46_v19, %v46_v19 }
  0x87   :  { %v52_v21 = vsel %vm29_vm0, %v48_v20, 0.0 }
  0x88   :  { %53 = vadd.xlane.f32.xlu1 %v52_v21 }
  0xf3   :  { %v51_v22 = vpop.xlane.xlu1 %50 }
  0xf4   :  { %v55_v23 = vmul.f32 %v51_v22, %v42_v11 }
  0xf6   :  { %v57_v24 = vadd.f32 1e-05, %v55_v23 }
  0xf8   :  { %226 = vrsqrt.f32 %v57_v24  ;;  %vm65_vm3 = vweird.f32 %v57_v24 }
  0xfb   :  { %v54_v26 = vpop.xlane.xlu1 %53 }
  0xfc   :  { %v56_v27 = vmul.f32 %v54_v26, %v42_v11 }
  0xfe   :  { %v227_v29 = vpop.eup %226  ;;  %v58_v30 = vadd.f32 1e-05, %v56_v27 }
  0xff   :  { %v60_v31 = vmul.f32 %v227_v29, %v57_v24  ;;  %vm66_vm2 = vweird.f32 %v227_v29 }
 0x100   :  { %228 = vrsqrt.f32 %v58_v30  ;;  %vm67_vm4 = vmor %vm65_vm3, %vm66_vm2  ;;  %vm75_vm7 = vweird.f32 %v58_v30 }
 0x101   :  { %v61_v32 = vmul.f32 %v227_v29, %v60_v31 }
 0x103   :  { %v62_v33 = vmul.f32 0.5, %v61_v32 }
 0x105   :  { %v63_v34 = vsub.f32 1.5, %v62_v33 }
 0x106   :  { %v229_v35 = vpop.eup %228 }
 0x107   :  { %v64_v36 = vmul.f32 %v227_v29, %v63_v34  ;;  %v70_v37 = vmul.f32 %v229_v35, %v58_v30  ;;  %vm76_vm5 = vweird.f32 %v229_v35 }
 0x108   :  { %vm77_vm8 = vmor %vm75_vm7, %vm76_vm5 }
 0x109   :  { %v68_v39 = vsel %vm67_vm4, %v227_v29, %v64_v36  ;;  %v71_v40 = vmul.f32 %v229_v35, %v70_v37 }
 0x10a   :  { %v79_v42 = vmul.f32 %v68_v39, %v45_v14 }
 0x10b   :  { %v72_v43 = vmul.f32 0.5, %v71_v40 }
 0x10c   :  { %v85_v44 = vmul.f32 %v221_v38, %v79_v42 }
 0x10d   :  { %v73_v45 = vsub.f32 1.5, %v72_v43 }
 0x10e   :  { %v91_v46 = vadd.f32 %v222_v41, %v85_v44 }
 0x10f   :  { %v74_v47 = vmul.f32 %v229_v35, %v73_v45 }
 0x110   :  { %v93_v48 = vpack.c.bf16 %v91_v46, %v91_v46 }
 0x111   :  { %v78_v49 = vsel %vm77_vm8, %v229_v35, %v74_v47 }
 0x112   :  { %96 = vst.msk [vmem:[#allocation2] sm:$0xf] %vm95_vm6, %v93_v48  ;;  %v80_v50 = vmul.f32 %v78_v49, %v46_v19 }
 0x114   :  { %v86_v51 = vmul.f32 %v221_v38, %v80_v50 }
 0x116   :  { %v92_v52 = vadd.f32 %v222_v41, %v86_v51 }
 0x118   :  { %v94_v53 = vpack.c.bf16 %v92_v52, %v92_v52 }
 0x11a   :  { %97 = vst.msk [vmem:[#allocation2 + $0x4] sm:$0xf] %vm95_vm6, %v94_v53 }
 0x121   :  { %v208_v54 = vld [vmem:[#allocation2] sm:$0xff] }
 0x122   :  { %205 = vmatmul.msk.bf16.vlgmr.msra.gmra.mxu0 %vm29_vm0, %v208_v54 }
 0x19f   :  { %v138_v56 = vpop.f32.mrf.mxu0 }
 0x1a0   :  { %v139_v57 = vadd.f32 %v223_v55, %v138_v56 }
 0x1a2   :  { %v206_v58 = vmul.f32 -1.702, %v139_v57 }
 0x1a4   :  { %v147_v59 = vmul.f32 1.442695, %v206_v58 }
 0x1a6   :  { %230 = vpow2.f32 %v147_v59 }
 0x1a7   :  { %v140_v60 = vpop.f32.mrf.mxu0 }
 0x1a8   :  { %v141_v61 = vadd.f32 %v223_v55, %v140_v60 }
 0x1aa   :  { %v207_v62 = vmul.f32 -1.702, %v141_v61 }
 0x1ac   :  { %v231_v63 = vpop.eup %230  ;;  %v149_v0 = vmul.f32 1.442695, %v207_v62 }
 0x1ad   :  { %v151_v1 = vadd.f32 1.0, %v231_v63 }
 0x1ae   :  { %232 = vpow2.f32 %v149_v0 }
 0x1af   :  { %234 = vrcp.f32 %v151_v1  ;;  %v164_v11 = vand.u32 2147483648, %v151_v1  ;;  %vm158_vm10 = vweird.f32 %v151_v1  ;;  %v162_v12 = vand.u32 2147483647, %v151_v1 }
 0x1b1   :  { %v165_v18 = vor.u32 1.1754944e-38, %v164_v11  ;;  %vm163_vm13 = vcmp.eq.f32.partialorder %v162_v12, 8.507059e+37 }
 0x1b4   :  { %v233_v2 = vpop.eup %232 }
 0x1b5   :  { %v235_v3 = vpop.eup %234  ;;  %v152_v4 = vadd.f32 1.0, %v233_v2 }
 0x1b6   :  { %v154_v5 = vmul.f32 %v235_v3, %v151_v1  ;;  %vm159_vm9 = vweird.f32 %v235_v3 }
 0x1b7   :  { %236 = vrcp.f32 %v152_v4  ;;  %vm160_vm11 = vmor %vm158_vm10, %vm159_vm9  ;;  %v179_v14 = vand.u32 2147483648, %v152_v4  ;;  %v177_v17 = vand.u32 2147483647, %v152_v4  ;;  %vm173_vm14 = vweird.f32 %v152_v4 }
 0x1b8   :  { %v155_v6 = vsub.f32 1.0, %v154_v5 }
 0x1b9   :  { %v180_v21 = vor.u32 1.1754944e-38, %v179_v14  ;;  %vm178_vm0 = vcmp.eq.f32.partialorder %v177_v17, 8.507059e+37 }
 0x1ba   :  { %v156_v7 = vmul.f32 %v235_v3, %v155_v6 }
 0x1bc   :  { %v157_v9 = vadd.f32 %v235_v3, %v156_v7 }
 0x1bd   :  { %v237_v8 = vpop.eup %236 }
 0x1be   :  { %v169_v10 = vmul.f32 %v237_v8, %v152_v4  ;;  %v161_v15 = vsel %vm160_vm11, %v235_v3, %v157_v9  ;;  %vm174_vm12 = vweird.f32 %v237_v8 }
 0x1bf   :  { %v166_v20 = vsel %vm163_vm13, %v165_v18, %v161_v15  ;;  %vm175_vm15 = vmor %vm173_vm14, %vm174_vm12 }
 0x1c0   :  { %v170_v13 = vsub.f32 1.0, %v169_v10  ;;  %v183_v24 = vmul.f32 %v166_v20, %v139_v57 }
 0x1c2   :  { %v171_v16 = vmul.f32 %v237_v8, %v170_v13 }
 0x1c4   :  { %v172_v19 = vadd.f32 %v237_v8, %v171_v16 }
 0x1c6   :  { %v176_v22 = vsel %vm175_vm15, %v237_v8, %v172_v19 }
 0x1c7   :  { %v181_v23 = vsel %vm178_vm0, %v180_v21, %v176_v22 }
 0x1c8   :  { %v184_v25 = vmul.f32 %v181_v23, %v141_v61 }
 0x1ca   :  { %v218_v26 = vpack.c.bf16 %v184_v25, %v183_v24 }
 0x1cc   :  { %219 = vst [vmem:[%s300_s5] sm:$0xff] %v218_v26  }

// kernel: encode_image.19
= control target key start
LH: loop header
LB: loop body
LE: loop exit
PB: predicated region body
PF: predicated region fallthrough
CT: control target
= control target key end

     0   :  { %vm21_vm0 = vcmask 261120   ;;  %v194_v2 = vmov 0.0   ;;  %vm136_vm1 = vcmask 257024   ;;  %s263_s1 = inlined_call_operand.vmem [shape: bf16[128,32], index: 1, kind: input, shape index: {}]   ;;  %s264_s2 = inlined_call_operand.vmem [shape: f32[1,32], index: 2, kind: input, shape index: {}]   ;;  %s265_s0 = inlined_call_operand.vmem [shape: bf16[16,128], index: 0, kind: input, shape index: {}]   ;;  %s266_s3 = inlined_call_operand.vmem [shape: bf16[16,32], index: 3, kind: input, shape index: {}]   ;;  %s267_s4 = inlined_call_operand.vmem [shape: bf16[16,32], index: 4, kind: output, shape index: {}]  }
   0x1   :  { %v187_v0 = vld [vmem:[%s263_s1 + $0x38] sm:$0xff]  ;;  %v186_v1 = vld [vmem:[%s263_s1 + $0x30] sm:$0xff]  ;;  %22 = vst.msk [vmem:[#allocation2] sm:$0xff] %vm21_vm0, %v194_v2  ;;  %v185_v3 = vld [vmem:[%s263_s1 + $0x28] sm:$0xff] }
   0x2   :  { %98 = vmatpush.bf16.msra.mxu0 %v187_v0  ;;  %23 = vst.msk [vmem:[#allocation2 + $0x8] sm:$0xff] %vm21_vm0, %v194_v2  ;;  %v184_v4 = vld [vmem:[%s263_s1 + $0x20] sm:$0xff]  ;;  %v183_v5 = vld [vmem:[%s263_s1 + $0x18] sm:$0xff]  ;;  %v182_v6 = vld [vmem:[%s263_s1 + $0x10] sm:$0xff] }
   0x3   :  { %v181_v7 = vld [vmem:[%s263_s1 + $0x8] sm:$0xff]  ;;  %v180_v8 = vld [vmem:[%s263_s1] sm:$0xff] }
   0x4   :  { %v179_v9 = vld [vmem:[%s265_s0] sm:$0xff] }
   0x5   :  { %v189_v13 = vld [vmem:[%s266_s3] sm:$0xff]  }
   0x6   :  { %99 = vmatpush.bf16.msra.mxu0 %v186_v1  ;;  %v193_v15 = vld [vmem:[%s264_s2] ss:$0 sm:$0xff]  ;;  %v190_v17 = vunpack.c.l.bf16 %v189_v13  ;;  %v191_v23 = vunpack.c.h.bf16 %v189_v13 }
   0x8   :  { %v24_v10 = vld [vmem:[#allocation2] sm:$0xff] }
   0x9   :  { %v25_v14 = vld [vmem:[#allocation2 + $0x8] sm:$0xff] }
   0xa   :  { %100 = vmatpush.bf16.msra.mxu0 %v185_v3 }
   0xe   :  { %101 = vmatpush.bf16.msra.mxu0 %v184_v4 }
  0x12   :  { %102 = vmatpush.bf16.msra.mxu0 %v183_v5 }
  0x16   :  { %103 = vmatpush.bf16.msra.mxu0 %v182_v6 }
  0x1a   :  { %104 = vmatpush.bf16.msra.mxu0 %v181_v7 }
  0x1e   :  { %105 = vmatpush.bf16.msra.mxu0 %v180_v8 }
  0x21   :  { %106 = vmatmul.bf16.vlgmr.msra.gmra.mxu0 %v179_v9 }
  0x9e   :  { %v107_v11 = vpop.f32.mrf.mxu0 }
  0x9f   :  { %v112_v12 = vadd.f32 %v107_v11, %v24_v10 }
  0xa1   :  { %115 = vst.msk [vmem:[#allocation2] sm:$0xff] %vm21_vm0, %v112_v12 }
  0xa6   :  { %v109_v16 = vpop.f32.mrf.mxu0 }
  0xa7   :  { %v113_v18 = vadd.f32 %v109_v16, %v25_v14 }
  0xa8   :  { %v120_v19 = vld [vmem:[#allocation2] sm:$0xff] }
  0xa9   :  { %v126_v20 = vadd.f32 %v193_v15, %v120_v19  ;;  %116 = vst.msk [vmem:[#allocation2 + $0x8] sm:$0xff] %vm21_vm0, %v113_v18 }
  0xab   :  { %v132_v21 = vadd.f32 %v190_v17, %v126_v20 }
  0xad   :  { %v134_v22 = vpack.c.bf16 %v132_v21, %v132_v21 }
  0xaf   :  { %137 = vst.msk [vmem:[%s267_s4] sm:$0xf] %vm136_vm1, %v134_v22 }
  0xb0   :  { %v121_v24 = vld [vmem:[#allocation2 + $0x8] sm:$0xff] }
  0xb1   :  { %v127_v25 = vadd.f32 %v193_v15, %v121_v24 }
  0xb3   :  { %v133_v26 = vadd.f32 %v191_v23, %v127_v25 }
  0xb5   :  { %v135_v27 = vpack.c.bf16 %v133_v26, %v133_v26 }
  0xb7   :  { %138 = vst.msk [vmem:[%s267_s4 + $0x4] sm:$0xf] %vm136_vm1, %v135_v27 }

// kernel: encode_image.17
= control target key start
LH: loop header
LB: loop body
LE: loop exit
PB: predicated region body
PF: predicated region fallthrough
CT: control target
= control target key end

     0   :  { %vm22_vm0 = vcmask 261120   ;;  %v120_v1 = vmov 0.0   ;;  %vm91_vm1 = vcmask 257024   ;;  %s172_s1 = inlined_call_operand.vmem [shape: bf16[32,32], index: 1, kind: input, shape index: {}]   ;;  %s173_s2 = inlined_call_operand.vmem [shape: f32[1,32], index: 2, kind: input, shape index: {}]   ;;  %s174_s0 = inlined_call_operand.vmem [shape: bf16[16,32], index: 0, kind: input, shape index: {}]   ;;  %s175_s3 = inlined_call_operand.vmem [shape: bf16[16,32], index: 3, kind: input, shape index: {}]   ;;  %s176_s4 = inlined_call_operand.vmem [shape: bf16[16,32], index: 4, kind: output, shape index: {}]  }
   0x1   :  { %v113_v0 = vld [vmem:[%s172_s1 + $0x8] sm:$0xff]  ;;  %23 = vst.msk [vmem:[#allocation2] sm:$0xff] %vm22_vm0, %v120_v1  ;;  %v112_v2 = vld [vmem:[%s172_s1] sm:$0xff] }
   0x2   :  { %24 = vst.msk [vmem:[#allocation2 + $0x8] sm:$0xff] %vm22_vm0, %v120_v1  ;;  %60 = vmatpush.bf16.msra.mxu0 %v113_v0  ;;  %v111_v3 = vld [vmem:[%s174_s0] sm:$0xff] }
   0x3   :  { %v115_v7 = vld [vmem:[%s175_s3] sm:$0xff]  }
   0x4   :  { %v119_v9 = vld [vmem:[%s173_s2] ss:$0 sm:$0xff]  ;;  %v116_v11 = vunpack.c.l.bf16 %v115_v7  ;;  %v117_v17 = vunpack.c.h.bf16 %v115_v7 }
   0x6   :  { %61 = vmatpush.bf16.msra.mxu0 %v112_v2 }
   0x8   :  { %v25_v4 = vld [vmem:[#allocation2] sm:$0xff] }
   0x9   :  { %110 = vmatmul.msk.bf16.vlgmr.msra.gmra.mxu0 %vm22_vm0, %v111_v3  ;;  %v26_v8 = vld [vmem:[#allocation2 + $0x8] sm:$0xff] }
  0x86   :  { %v63_v5 = vpop.f32.mrf.mxu0 }
  0x87   :  { %v68_v6 = vadd.f32 %v63_v5, %v25_v4 }
  0x89   :  { %70 = vst.msk [vmem:[#allocation2] sm:$0xff] %vm22_vm0, %v68_v6 }
  0x8e   :  { %v65_v10 = vpop.f32.mrf.mxu0 }
  0x8f   :  { %v69_v12 = vadd.f32 %v65_v10, %v26_v8 }
  0x90   :  { %v75_v13 = vld [vmem:[#allocation2] sm:$0xff] }
  0x91   :  { %v81_v14 = vadd.f32 %v119_v9, %v75_v13  ;;  %71 = vst.msk [vmem:[#allocation2 + $0x8] sm:$0xff] %vm22_vm0, %v69_v12 }
  0x93   :  { %v87_v15 = vadd.f32 %v116_v11, %v81_v14 }
  0x95   :  { %v89_v16 = vpack.c.bf16 %v87_v15, %v87_v15 }
  0x97   :  { %92 = vst.msk [vmem:[%s176_s4] sm:$0xf] %vm91_vm1, %v89_v16 }
  0x98   :  { %v76_v18 = vld [vmem:[#allocation2 + $0x8] sm:$0xff] }
  0x99   :  { %v82_v19 = vadd.f32 %v119_v9, %v76_v18 }
  0x9b   :  { %v88_v20 = vadd.f32 %v117_v17, %v82_v19 }
  0x9d   :  { %v90_v21 = vpack.c.bf16 %v88_v20, %v88_v20 }
  0x9f   :  { %93 = vst.msk [vmem:[%s176_s4 + $0x4] sm:$0xf] %vm91_vm1, %v90_v21 }

// kernel: encode_image.25
= control target key start
LH: loop header
LB: loop body
LE: loop exit
PB: predicated region body
PF: predicated region fallthrough
CT: control target
= control target key end

     0   :  { %vm25_vm0 = vcmask 254976   ;;  %s212_s0 = inlined_call_operand.vmem [shape: bf16[2,32], index: 0, kind: input, shape index: {}]   ;;  %s213_s1 = inlined_call_operand.vmem [shape: f32[1,32], index: 1, kind: input, shape index: {}]   ;;  %s214_s2 = inlined_call_operand.vmem [shape: f32[1,32], index: 2, kind: input, shape index: {}]   ;;  %s215_s3 = inlined_call_operand.vmem [shape: bf16[32,16], index: 3, kind: input, shape index: {}]   ;;  %s216_s4 = inlined_call_operand.hbm [shape: f32[2,16], index: 4, kind: output, shape index: {}]  }
   0x1   :  { %v23_v0 = vld [vmem:[%s212_s0] sm:$0x1] }
   0x2   :  { %v24_v1 = vunpack.c.l.bf16 %v23_v0 }
   0x3   :  { %9 = vsyncpa [#allocation4], 0  ;;  %v165_v3 = vmov 32.0   ;;  %v130_v15 = vld [vmem:[%s215_s3 + $0x8] sm:$0xff]  ;;  %v129_v17 = vld [vmem:[%s215_s3] sm:$0xff]  ;;  %vm66_vm5 = vcmask 253952  }
   0x4   :  { %v26_v2 = vsel %vm25_vm0, %v24_v1, 0.0  ;;  %135 = vrcp.f32 %v165_v3  ;;  %95 = vmatpush.bf16.msra.mxu0 %v130_v15  ;;  %v133_v26 = vld [vmem:[%s213_s1] ss:$0 sm:$0xff]  ;;  %vm85_vm6 = vcmask 261120   ;;  %s166_s23 = smov [#allocation3]   ;;  %s111_s1 = sshll.u32 %s216_s4, 4  ;;  %s112_s1 = int_to_ptr.hbm [resolvable:$true] %s111_s1 }
   0x5   :  { %27 = vadd.xlane.f32.xlu0 %v26_v2  ;;  %v134_v28 = vld [vmem:[%s214_s2] ss:$0 sm:$0xff]  ;;  %s109_s24 = sshll.u32 %s166_s23, 4  ;;  %vm102_vm7 = vcmask 123904   ;;  %s110_s24 = int_to_ptr.vmem [resolvable:$true] %s109_s24 }
   0x8   :  { %96 = vmatpush.bf16.msra.mxu0 %v129_v17 }
   0xa   :  { %v136_v4 = vpop.eup %135 }
   0xb   :  { %v30_v5 = vmul.f32 32.0, %v136_v4  ;;  %vm34_vm1 = vweird.f32 %v136_v4 }
   0xd   :  { %v31_v6 = vsub.f32 1.0, %v30_v5 }
   0xf   :  { %v32_v7 = vmul.f32 %v136_v4, %v31_v6 }
  0x11   :  { %v33_v8 = vadd.f32 %v136_v4, %v32_v7 }
  0x13   :  { %v35_v9 = vsel %vm34_vm1, %v136_v4, %v33_v8 }
  0x78   :  { %v28_v10 = vpop.xlane.xlu0 %27 }
  0x79   :  { %v36_v11 = vmul.f32 %v35_v9, %v28_v10 }
  0x7b   :  { %v37_v12 = vsub.f32 %v24_v1, %v36_v11 }
  0x7d   :  { %v38_v13 = vmul.f32 %v37_v12, %v37_v12 }
  0x7f   :  { %v39_v14 = vsel %vm25_vm0, %v38_v13, 0.0 }
  0x80   :  { %40 = vadd.xlane.f32.xlu0 %v39_v14 }
  0xf3   :  { %v41_v16 = vpop.xlane.xlu0 %40 }
  0xf4   :  { %v42_v18 = vmul.f32 %v41_v16, %v35_v9 }
  0xf6   :  { %v43_v19 = vadd.f32 1e-05, %v42_v18 }
  0xf8   :  { %137 = vrsqrt.f32 %v43_v19  ;;  %vm50_vm3 = vweird.f32 %v43_v19 }
  0xfe   :  { %v138_v20 = vpop.eup %137 }
  0xff   :  { %v45_v21 = vmul.f32 %v138_v20, %v43_v19  ;;  %vm51_vm2 = vweird.f32 %v138_v20 }
 0x100   :  { %vm52_vm4 = vmor %vm50_vm3, %vm51_vm2 }
 0x101   :  { %v46_v22 = vmul.f32 %v138_v20, %v45_v21 }
 0x103   :  { %v47_v23 = vmul.f32 0.5, %v46_v22 }
 0x105   :  { %v48_v24 = vsub.f32 1.5, %v47_v23 }
 0x107   :  { %v49_v25 = vmul.f32 %v138_v20, %v48_v24 }
 0x109   :  { %v53_v27 = vsel %vm52_vm4, %v138_v20, %v49_v25 }
 0x10a   :  { %v54_v29 = vmul.f32 %v53_v27, %v37_v12 }
 0x10c   :  { %v59_v30 = vmul.f32 %v133_v26, %v54_v29 }
 0x10e   :  { %v64_v31 = vadd.f32 %v134_v28, %v59_v30 }
 0x110   :  { %v65_v32 = vpack.c.bf16 %v64_v31, %v64_v31 }
 0x112   :  { %67 = vst.msk [vmem:[#allocation2] sm:$0x1] %vm66_vm5, %v65_v32 }
 0x119   :  { %v68_v33 = vld [vmem:[#allocation2] sm:$0x1] }
 0x11a   :  { %128 = vmatmul.msk.bf16.vlgmr.msra.gmra.mxu0 %vm85_vm6, %v68_v33 }
 0x197   :  { %v98_v34 = vpop.f32.mrf.mxu0 }
 0x198   :  { %103 = vst.msk [vmem:[#allocation3] sm:$0x3] %vm102_vm7, %v98_v34 }
 0x199   :  { %114 = dma.vmem_to_hbm [thread:$0]  %s110_s24, 32, %s112_s1, [#allocation4]  }
 0x19f   :  { %v100_v35 = vpop.f32.mrf.mxu0 }
 0x1a0   :  { %163 = dma.done.wait [#allocation4], 32  }
 0x1a1   :  { %164 = vsyncadd [#allocation4], 4294967264 }
 0x1a2   :  { %119 = vsyncpa [#allocation4], 1 }

</bundles_post_ra>
